<compile_context>
chip_gen: v5e
topology: v5e:2x2
jax: 0.10.0
libtpu: 0.0.40
codegen_flags: <defaults>
</compile_context>

<pallas_src>
import jax
import jax.numpy as jnp
from jax.experimental import pallas as pl
from jax.experimental.pallas import tpu as pltpu

N = 16          # number of graph nodes
IN_C = 8        # inchannels
EMB = 32        # embedding
HEADS = 12      # GATConv heads
NEG_SLOPE = 0.2 # GATConv leaky_relu default


def embedding_block_kernel(x_ref, adj_t_ref, w_emb_ref, b_emb_ref, w_gat_ref,
                           a_srcT_ref, a_dst_ref, p1_ref, p1t_ref,
                           bmask_ref, wmask_ref, ret_ref, b_gat_ref, o_ref):
    f32 = jnp.float32

    # ---- nn.Linear + ReLU (MXU) ----
    emb = jnp.dot(x_ref[...], w_emb_ref[...], preferred_element_type=f32)
    emb = jnp.maximum(emb + b_emb_ref[...], 0.0)                        # [N, EMB]

    # ---- GATConv shared projection, all heads at once (MXU) ----
    xp = jnp.dot(emb, w_gat_ref[...], preferred_element_type=f32)       # [N, H*EMB]

    # ---- attention coefficients via block-diagonal matmuls (MXU, no XLU reductions) ----
    a_dst = jnp.dot(xp, a_dst_ref[...], preferred_element_type=f32)     # [N, H]
    # a_srcT[h, j] = <xp[j, h*EMB:(h+1)*EMB], att_src[h]>  (QK^T-style dot_general)
    a_srcT = jax.lax.dot_general(a_srcT_ref[...], xp,
                                 (((1,), (1,)), ((), ())),
                                 preferred_element_type=f32)            # [H, N]

    # ---- stacked logits [H*N, N]: logits[h*N+i, j] = a_dst[i,h] + a_src[j,h] ----
    dst_all = jnp.dot(p1_ref[...], a_dst, preferred_element_type=f32)        # [H*N, H]
    dst_col = jnp.sum(dst_all * bmask_ref[...], axis=-1, keepdims=True)      # [H*N, 1]
    src_part = jnp.dot(bmask_ref[...], a_srcT, preferred_element_type=f32)   # [H*N, N]
    logits = dst_col + src_part

    # ---- single batched leaky_relu / mask / softmax across all heads ----
    logits = jnp.where(logits > 0, logits, NEG_SLOPE * logits)
    masked = jnp.where(adj_t_ref[...] > 0, logits, -1e30)
    m = jnp.max(masked, axis=-1, keepdims=True)
    p = jnp.exp(masked - m)              # masked entries underflow to exactly 0
    attn = p / jnp.sum(p, axis=-1, keepdims=True)                            # [H*N, N]

    # ---- fused aggregation: no per-head loop, no serial accumulation chain ----
    # wide[h*N+i, h'*EMB+d] = sum_j attn[h,i,j] * xp[j, h'*EMB+d]
    wide = jnp.dot(attn, xp, preferred_element_type=f32)                     # [H*N, H*EMB]
    # keep only the h'==h blocks and collapse lanes to [H*N, EMB]
    per_head = jnp.dot(wide * wmask_ref[...], ret_ref[...],
                       preferred_element_type=f32)                           # [H*N, EMB]
    # sum over heads with a constant selection matrix: [N, H*N] @ [H*N, EMB]
    head_sum = jnp.dot(p1t_ref[...], per_head, preferred_element_type=f32)   # [N, EMB]

    y = head_sum * (1.0 / HEADS) + b_gat_ref[...]   # concat=False -> mean over heads + bias
    o_ref[...] = jnp.maximum(emb + y, 0.0)          # relu(embedding + y)


def embedding_block(x, adj, w_emb, b_emb, w_gat, att_src, att_dst, b_gat):
    """Wrapper: precompute constant selection / mask matrices, call the kernel once."""
    f32 = jnp.float32
    eye_h = jnp.eye(HEADS, dtype=f32)
    eye_n = jnp.eye(N, dtype=f32)
    eye_e = jnp.eye(EMB, dtype=f32)

    # Block-diagonal attention-vector matrices: A[h*EMB+e, h'] = att[h, e] * (h==h')
    a_src_bd = (att_src[:, :, None] * eye_h[:, None, :]).reshape(HEADS * EMB, HEADS)
    a_dst_bd = (att_dst[:, :, None] * eye_h[:, None, :]).reshape(HEADS * EMB, HEADS)
    a_srcT = a_src_bd.T                               # [H, H*EMB]

    p1 = jnp.tile(eye_n, (HEADS, 1))                  # [H*N, N]   row h*N+i -> e_i
    p1t = p1.T                                        # [N, H*N]
    bmask = jnp.repeat(eye_h, N, axis=0)              # [H*N, H]   row h*N+i -> e_h
    wmask = jnp.repeat(bmask, EMB, axis=1)            # [H*N, H*EMB] block-diag 0/1 mask
    ret = jnp.tile(eye_e, (HEADS, 1))                 # [H*EMB, EMB]
    adj_t = jnp.tile(adj, (HEADS, 1))                 # [H*N, N]   adj repeated per head

    inputs = (x, adj_t, w_emb, b_emb, w_gat, a_srcT, a_dst_bd, p1, p1t,
              bmask, wmask, ret, b_gat)

    flops = 2 * (N * IN_C * EMB                        # embedding linear
                 + N * EMB * HEADS * EMB               # GAT projection
                 + 2 * N * (HEADS * EMB) * HEADS       # a_src / a_dst block-diag matmuls
                 + (HEADS * N) * N * (HEADS * EMB)     # wide attn @ xp
                 + (HEADS * N) * (HEADS * EMB) * EMB   # block extraction matmul
                 + N * (HEADS * N) * EMB)              # head sum
    bytes_accessed = sum(int(a.size) * 4 for a in inputs) + N * EMB * 4

    vmem = pl.BlockSpec(memory_space=pltpu.MemorySpace.VMEM)
    return pl.pallas_call(
        embedding_block_kernel,
        out_shape=jax.ShapeDtypeStruct((N, EMB), jnp.float32),
        in_specs=[vmem] * len(inputs),
        out_specs=vmem,
        cost_estimate=pl.CostEstimate(flops=flops,
                                      transcendentals=HEADS * N * N,
                                      bytes_accessed=bytes_accessed),
    )(*inputs)


def reference(x, adj, w_emb, b_emb, w_gat, att_src, att_dst, b_gat):
    """Pure-JAX reference with identical semantics (for validation)."""
    emb = jnp.maximum(x @ w_emb + b_emb, 0.0)
    xp = (emb @ w_gat).reshape(N, HEADS, EMB)
    a_src = jnp.sum(xp * att_src[None], axis=-1)                 # [N, H]
    a_dst = jnp.sum(xp * att_dst[None], axis=-1)                 # [N, H]
    logits = a_dst.T[:, :, None] + a_src.T[:, None, :]           # [H, N, N]
    logits = jnp.where(logits > 0, logits, NEG_SLOPE * logits)
    masked = jnp.where(adj[None] > 0, logits, -1e30)
    p = jnp.where(adj[None] > 0,
                  jnp.exp(masked - jnp.max(masked, axis=-1, keepdims=True)), 0.0)
    attn = p / jnp.sum(p, axis=-1, keepdims=True)
    out_h = jnp.einsum('hij,hjd->hid', attn, jnp.transpose(xp, (1, 0, 2)))
    y = jnp.mean(out_h, axis=0) + b_gat
    return jnp.maximum(emb + y, 0.0)


if __name__ == "__main__":
    key = jax.random.PRNGKey(0)
    ks = jax.random.split(key, 7)

    # node features
    x = jax.random.normal(ks[0], (N, IN_C), jnp.float32)

    # deterministic edge_index (src -> dst), no duplicate edges: ring + chords
    src = jnp.array([i for i in range(N)] + [0, 3, 5, 7, 9, 11], jnp.int32)
    dst = jnp.array([(i + 1) % N for i in range(N)] + [8, 12, 1, 14, 2, 4], jnp.int32)
    edge_index = jnp.stack([src, dst])                            # [2, 22]

    # dense adjacency mask (glue, plain JAX): adj[dst, src] = 1, plus self-loops
    adj = jnp.zeros((N, N), jnp.float32).at[dst, src].set(1.0)
    adj = adj.at[jnp.arange(N), jnp.arange(N)].set(1.0)

    # deterministic parameters (shapes follow the PyTorch module; pre-transposed)
    w_emb = 0.1 * jax.random.normal(ks[1], (IN_C, EMB), jnp.float32)        # Linear weight^T
    b_emb = 0.1 * jax.random.normal(ks[2], (1, EMB), jnp.float32)           # Linear bias
    w_gat = 0.1 * jax.random.normal(ks[3], (EMB, HEADS * EMB), jnp.float32) # GAT lin weight^T
    att_src = 0.1 * jax.random.normal(ks[4], (HEADS, EMB), jnp.float32)     # GAT att_src
    att_dst = 0.1 * jax.random.normal(ks[5], (HEADS, EMB), jnp.float32)     # GAT att_dst
    b_gat = 0.1 * jax.random.normal(ks[6], (1, EMB), jnp.float32)           # GAT bias

    out = embedding_block(x, adj, w_emb, b_emb, w_gat, att_src, att_dst, b_gat)
    out = jax.block_until_ready(out)

    ref = reference(x, adj, w_emb, b_emb, w_gat, att_src, att_dst, b_gat)
    assert out.shape == (N, EMB)
    assert jnp.allclose(out, ref, rtol=1e-5, atol=1e-5), "Pallas kernel mismatch vs reference"
    print("KERNEL_OK")
</pallas_src>

<mosaic_0001>
module attributes {stable_mosaic.version = 11 : i64} {
  func.func @embedding_block_kernel(%arg0: memref<16x8xf32, #tpu.memory_space<vmem>>, %arg1: memref<192x16xf32, #tpu.memory_space<vmem>>, %arg2: memref<8x32xf32, #tpu.memory_space<vmem>>, %arg3: memref<1x32xf32, #tpu.memory_space<vmem>>, %arg4: memref<32x384xf32, #tpu.memory_space<vmem>>, %arg5: memref<12x384xf32, #tpu.memory_space<vmem>>, %arg6: memref<384x12xf32, #tpu.memory_space<vmem>>, %arg7: memref<192x16xf32, #tpu.memory_space<vmem>>, %arg8: memref<16x192xf32, #tpu.memory_space<vmem>>, %arg9: memref<192x12xf32, #tpu.memory_space<vmem>>, %arg10: memref<192x384xf32, #tpu.memory_space<vmem>>, %arg11: memref<384x32xf32, #tpu.memory_space<vmem>>, %arg12: memref<1x32xf32, #tpu.memory_space<vmem>>, %arg13: memref<16x32xf32, #tpu.memory_space<vmem>>) attributes {dimension_semantics = [], scalar_prefetch = 0 : i64, scratch_operands = 0 : i64, tpu.core_type = #tpu.core_type<tc>} {
    %c0 = arith.constant 0 : index
    %c0_0 = arith.constant 0 : index
    %0 = vector.load %arg0[%c0, %c0_0] : memref<16x8xf32, #tpu.memory_space<vmem>>, vector<16x8xf32>
    %c0_1 = arith.constant 0 : index
    %c0_2 = arith.constant 0 : index
    %1 = vector.load %arg2[%c0_1, %c0_2] : memref<8x32xf32, #tpu.memory_space<vmem>>, vector<8x32xf32>
    %cst = arith.constant dense<0.000000e+00> : vector<16x32xf32>
    %2 = tpu.matmul %0, %1, %cst {dimension_numbers = #tpu.dot_dimension_numbers<[1], [0], [0], [1], [0, 0, 1, 1], [], []>} : vector<16x8xf32>, vector<8x32xf32>, vector<16x32xf32> -> vector<16x32xf32>
    %c0_3 = arith.constant 0 : index
    %c0_4 = arith.constant 0 : index
    %3 = vector.load %arg3[%c0_3, %c0_4] : memref<1x32xf32, #tpu.memory_space<vmem>>, vector<1x32xf32>
    %4 = vector.broadcast %3 : vector<1x32xf32> to vector<16x32xf32>
    %5 = arith.addf %2, %4 : vector<16x32xf32>
    %cst_5 = arith.constant 0.000000e+00 : f32
    %6 = vector.broadcast %cst_5 : f32 to vector<16x32xf32>
    %7 = arith.maximumf %5, %6 : vector<16x32xf32>
    %c0_6 = arith.constant 0 : index
    %c0_7 = arith.constant 0 : index
    %8 = vector.load %arg4[%c0_6, %c0_7] : memref<32x384xf32, #tpu.memory_space<vmem>>, vector<32x384xf32>
    %cst_8 = arith.constant dense<0.000000e+00> : vector<16x384xf32>
    %9 = tpu.matmul %7, %8, %cst_8 {dimension_numbers = #tpu.dot_dimension_numbers<[1], [0], [0], [1], [0, 0, 1, 1], [], []>} : vector<16x32xf32>, vector<32x384xf32>, vector<16x384xf32> -> vector<16x384xf32>
    %c0_9 = arith.constant 0 : index
    %c0_10 = arith.constant 0 : index
    %10 = vector.load %arg6[%c0_9, %c0_10] : memref<384x12xf32, #tpu.memory_space<vmem>>, vector<384x12xf32>
    %cst_11 = arith.constant dense<0.000000e+00> : vector<16x12xf32>
    %11 = tpu.matmul %9, %10, %cst_11 {dimension_numbers = #tpu.dot_dimension_numbers<[1], [0], [0], [1], [0, 0, 1, 1], [], []>} : vector<16x384xf32>, vector<384x12xf32>, vector<16x12xf32> -> vector<16x12xf32>
    %c0_12 = arith.constant 0 : index
    %c0_13 = arith.constant 0 : index
    %12 = vector.load %arg5[%c0_12, %c0_13] : memref<12x384xf32, #tpu.memory_space<vmem>>, vector<12x384xf32>
    %cst_14 = arith.constant dense<0.000000e+00> : vector<12x16xf32>
    %13 = tpu.matmul %12, %9, %cst_14 {dimension_numbers = #tpu.dot_dimension_numbers<[1], [1], [0], [0], [0, 0, 1, 0], [], []>} : vector<12x384xf32>, vector<16x384xf32>, vector<12x16xf32> -> vector<12x16xf32>
    %c0_15 = arith.constant 0 : index
    %c0_16 = arith.constant 0 : index
    %14 = vector.load %arg7[%c0_15, %c0_16] : memref<192x16xf32, #tpu.memory_space<vmem>>, vector<192x16xf32>
    %cst_17 = arith.constant dense<0.000000e+00> : vector<192x12xf32>
    %15 = tpu.matmul %14, %11, %cst_17 {dimension_numbers = #tpu.dot_dimension_numbers<[1], [0], [0], [1], [0, 0, 1, 1], [], []>} : vector<192x16xf32>, vector<16x12xf32>, vector<192x12xf32> -> vector<192x12xf32>
    %c0_18 = arith.constant 0 : index
    %c0_19 = arith.constant 0 : index
    %16 = vector.load %arg9[%c0_18, %c0_19] : memref<192x12xf32, #tpu.memory_space<vmem>>, vector<192x12xf32>
    %17 = arith.mulf %15, %16 : vector<192x12xf32>
    %cst_20 = arith.constant dense<0.000000e+00> : vector<192xf32>
    %18 = vector.multi_reduction <add>, %17, %cst_20 [1] : vector<192x12xf32> to vector<192xf32>
    %19 = vector.shape_cast %18 : vector<192xf32> to vector<192x1xf32>
    %c0_21 = arith.constant 0 : index
    %c0_22 = arith.constant 0 : index
    %20 = vector.load %arg9[%c0_21, %c0_22] : memref<192x12xf32, #tpu.memory_space<vmem>>, vector<192x12xf32>
    %cst_23 = arith.constant dense<0.000000e+00> : vector<192x16xf32>
    %21 = tpu.matmul %20, %13, %cst_23 {dimension_numbers = #tpu.dot_dimension_numbers<[1], [0], [0], [1], [0, 0, 1, 1], [], []>} : vector<192x12xf32>, vector<12x16xf32>, vector<192x16xf32> -> vector<192x16xf32>
    %22 = vector.broadcast %19 : vector<192x1xf32> to vector<192x16xf32>
    %23 = arith.addf %22, %21 : vector<192x16xf32>
    %cst_24 = arith.constant 0.000000e+00 : f32
    %24 = vector.broadcast %cst_24 : f32 to vector<192x16xf32>
    %25 = arith.cmpf ogt, %23, %24 : vector<192x16xf32>
    %cst_25 = arith.constant 2.000000e-01 : f32
    %26 = vector.broadcast %cst_25 : f32 to vector<192x16xf32>
    %27 = arith.mulf %26, %23 : vector<192x16xf32>
    %28 = arith.select %25, %23, %27 : vector<192x16xi1>, vector<192x16xf32>
    %c0_26 = arith.constant 0 : index
    %c0_27 = arith.constant 0 : index
    %29 = vector.load %arg1[%c0_26, %c0_27] : memref<192x16xf32, #tpu.memory_space<vmem>>, vector<192x16xf32>
    %cst_28 = arith.constant 0.000000e+00 : f32
    %30 = vector.broadcast %cst_28 : f32 to vector<192x16xf32>
    %31 = arith.cmpf ogt, %29, %30 : vector<192x16xf32>
    %cst_29 = arith.constant -1.000000e+30 : f32
    %32 = vector.broadcast %cst_29 : f32 to vector<192x16xf32>
    %33 = arith.select %31, %28, %32 : vector<192x16xi1>, vector<192x16xf32>
    %cst_30 = arith.constant dense<0xFF800000> : vector<192xf32>
    %34 = vector.multi_reduction <maximumf>, %33, %cst_30 [1] : vector<192x16xf32> to vector<192xf32>
    %35 = vector.shape_cast %34 : vector<192xf32> to vector<192x1xf32>
    %36 = vector.broadcast %35 : vector<192x1xf32> to vector<192x16xf32>
    %37 = arith.subf %33, %36 : vector<192x16xf32>
    %38 = math.exp %37 : vector<192x16xf32>
    %cst_31 = arith.constant dense<0.000000e+00> : vector<192xf32>
    %39 = vector.multi_reduction <add>, %38, %cst_31 [1] : vector<192x16xf32> to vector<192xf32>
    %40 = vector.shape_cast %39 : vector<192xf32> to vector<192x1xf32>
    %41 = vector.broadcast %40 : vector<192x1xf32> to vector<192x16xf32>
    %42 = arith.divf %38, %41 : vector<192x16xf32>
    %cst_32 = arith.constant dense<0.000000e+00> : vector<192x384xf32>
    %43 = tpu.matmul %42, %9, %cst_32 {dimension_numbers = #tpu.dot_dimension_numbers<[1], [0], [0], [1], [0, 0, 1, 1], [], []>} : vector<192x16xf32>, vector<16x384xf32>, vector<192x384xf32> -> vector<192x384xf32>
    %c0_33 = arith.constant 0 : index
    %c0_34 = arith.constant 0 : index
    %44 = vector.load %arg10[%c0_33, %c0_34] : memref<192x384xf32, #tpu.memory_space<vmem>>, vector<192x384xf32>
    %45 = arith.mulf %43, %44 : vector<192x384xf32>
    %c0_35 = arith.constant 0 : index
    %c0_36 = arith.constant 0 : index
    %46 = vector.load %arg11[%c0_35, %c0_36] : memref<384x32xf32, #tpu.memory_space<vmem>>, vector<384x32xf32>
    %cst_37 = arith.constant dense<0.000000e+00> : vector<192x32xf32>
    %47 = tpu.matmul %45, %46, %cst_37 {dimension_numbers = #tpu.dot_dimension_numbers<[1], [0], [0], [1], [0, 0, 1, 1], [], []>} : vector<192x384xf32>, vector<384x32xf32>, vector<192x32xf32> -> vector<192x32xf32>
    %c0_38 = arith.constant 0 : index
    %c0_39 = arith.constant 0 : index
    %48 = vector.load %arg8[%c0_38, %c0_39] : memref<16x192xf32, #tpu.memory_space<vmem>>, vector<16x192xf32>
    %cst_40 = arith.constant dense<0.000000e+00> : vector<16x32xf32>
    %49 = tpu.matmul %48, %47, %cst_40 {dimension_numbers = #tpu.dot_dimension_numbers<[1], [0], [0], [1], [0, 0, 1, 1], [], []>} : vector<16x192xf32>, vector<192x32xf32>, vector<16x32xf32> -> vector<16x32xf32>
    %cst_41 = arith.constant 0.0833333358 : f32
    %50 = vector.broadcast %cst_41 : f32 to vector<16x32xf32>
    %51 = arith.mulf %49, %50 : vector<16x32xf32>
    %c0_42 = arith.constant 0 : index
    %c0_43 = arith.constant 0 : index
    %52 = vector.load %arg12[%c0_42, %c0_43] : memref<1x32xf32, #tpu.memory_space<vmem>>, vector<1x32xf32>
    %53 = vector.broadcast %52 : vector<1x32xf32> to vector<16x32xf32>
    %54 = arith.addf %51, %53 : vector<16x32xf32>
    %55 = arith.addf %7, %54 : vector<16x32xf32>
    %cst_44 = arith.constant 0.000000e+00 : f32
    %56 = vector.broadcast %cst_44 : f32 to vector<16x32xf32>
    %57 = arith.maximumf %55, %56 : vector<16x32xf32>
    %c0_45 = arith.constant 0 : index
    %c0_46 = arith.constant 0 : index
    %58 = vector.load %arg13[%c0_45, %c0_46] : memref<16x32xf32, #tpu.memory_space<vmem>>, vector<16x32xf32>
    tpu.vector_store %arg13[%c0_45, %c0_46], %57 {strides = array<i32>} : memref<16x32xf32, #tpu.memory_space<vmem>>, vector<16x32xf32>,
    return
  }
}

</mosaic_0001>

<bundles_post_ra>
// kernel: tpu_custom_call.1
= control target key start
LH: loop header
LB: loop body
LE: loop exit
PB: predicated region body
PF: predicated region fallthrough
CT: control target
= control target key end

     0   :  { %vm52_vm0 = vcmask 64512   ;;  %s4267_s0 = inlined_call_operand.vmem [shape: f32[16,8], index: 0, kind: input, shape index: {}]   ;;  %s4268_s1 = inlined_call_operand.vmem [shape: f32[192,16], index: 1, kind: input, shape index: {}]   ;;  %s4269_s2 = inlined_call_operand.vmem [shape: f32[8,32], index: 2, kind: input, shape index: {}]   ;;  %s4270_s3 = inlined_call_operand.vmem [shape: f32[1,32], index: 3, kind: input, shape index: {}]   ;;  %s4271_s4 = inlined_call_operand.vmem [shape: f32[32,384], index: 4, kind: input, shape index: {}]   ;;  %s4272_s5 = inlined_call_operand.vmem [shape: f32[12,384], index: 5, kind: input, shape index: {}]   ;;  %s4273_s6 = inlined_call_operand.vmem [shape: f32[384,12], index: 6, kind: input, shape index: {}]   ;;  %s4274_s7 = inlined_call_operand.vmem [shape: f32[192,16], index: 7, kind: input, shape index: {}]   ;;  %s4275_s8 = inlined_call_operand.vmem [shape: f32[16,192], index: 8, kind: input, shape index: {}]   ;;  %s4276_s9 = inlined_call_operand.vmem [shape: f32[192,12], index: 9, kind: input, shape index: {}]   ;;  %s4277_s10 = inlined_call_operand.vmem [shape: f32[192,384], index: 10, kind: input, shape index: {}]   ;;  %s4278_s11 = inlined_call_operand.vmem [shape: f32[384,32], index: 11, kind: input, shape index: {}]   ;;  %s4279_s12 = inlined_call_operand.vmem [shape: f32[1,32], index: 12, kind: input, shape index: {}]   ;;  %s4280_s13 = inlined_call_operand.hbm [shape: f32[16,32], index: 13, kind: output, shape index: {}]  }
   0x1   :  { %v47_v0 = vld [vmem:[%s4269_s2] sm:$0xff]  ;;  %v93_v2 = vld [vmem:[%s4271_s4 + $0x48] sm:$0xff]  ;;  %v94_v3 = vld [vmem:[%s4271_s4 + $0x50] sm:$0xff] }
   0x2   :  { %v45_v1 = vld [vmem:[%s4267_s0] sm:$0xff]  ;;  %74 = vmatpush.msra.mxu0 %v47_v0  ;;  %v95_v4 = vld [vmem:[%s4271_s4 + $0x58] sm:$0xff]  ;;  %115 = vmatpush.msra.mxu1 %v93_v2 }
   0x3   :  { %2467 = vmatmul.msk.f32.vlgmr.msra.gmra.mxu0 %vm52_vm0, %v45_v1  ;;  %138 = vmatpush.msra.mxu2 %v94_v3 }
   0x4   :  { %161 = vmatpush.msra.mxu3 %v95_v4 }
   0x5   :  { %18 = vsyncpa [#allocation3], 0  ;;  %v46_v5 = vld [vmem:[%s4267_s0 + $0x8] sm:$0xff]  ;;  %v90_v6 = vld [vmem:[%s4271_s4 + $0x30] sm:$0xff]  ;;  %vm96_vm1 = vcmask 261120   ;;  %vm388_vm2 = vcmask 130048  }
   0x6   :  { %v91_v7 = vld [vmem:[%s4271_s4 + $0x38] sm:$0xff]  ;;  %v92_v8 = vld [vmem:[%s4271_s4 + $0x40] sm:$0xff]  ;;  %116 = vmatpush.msra.mxu1 %v90_v6  ;;  %v89_v11 = vld [vmem:[%s4271_s4 + $0x28] sm:$0xff]  ;;  %vm743_vm3 = vcmask 1043456   ;;  %vm598_vm4 = vcmask 97280   ;;  %s2743_s17 = smov 8  }
   0x7   :  { %139 = vmatpush.msra.mxu2 %v91_v7  ;;  %162 = vmatpush.msra.mxu3 %v92_v8  ;;  %v87_v9 = vld [vmem:[%s4271_s4 + $0x18] sm:$0xff]  ;;  %v88_v10 = vld [vmem:[%s4271_s4 + $0x20] sm:$0xff]  ;;  %v85_v13 = vld [vmem:[%s4271_s4 + $0x8] sm:$0xff] }
   0x8   :  { %117 = vmatpush.msra.mxu1 %v87_v9  ;;  %v84_v12 = vld [vmem:[%s4271_s4] sm:$0xff]  ;;  %v86_v14 = vld [vmem:[%s4271_s4 + $0x10] sm:$0xff]  ;;  %v187_v15 = vld [vmem:[%s4273_s6 + $0x78] sm:$0xff] }
   0x9   :  { %140 = vmatpush.msra.mxu2 %v88_v10  ;;  %163 = vmatpush.msra.mxu3 %v89_v11  ;;  %v186_v16 = vld [vmem:[%s4273_s6 + $0x70] sm:$0xff]  ;;  %v203_v17 = vld [vmem:[%s4273_s6 + $0xf8] sm:$0xff]  ;;  %v185_v19 = vld [vmem:[%s4273_s6 + $0x68] sm:$0xff] }
   0xa   :  { %118 = vmatpush.msra.mxu1 %v84_v12  ;;  %220 = vmatpush.msrb.mxu0 %v187_v15  ;;  %v219_v18 = vld [vmem:[%s4273_s6 + $0x178] sm:$0xff]  ;;  %v202_v20 = vld [vmem:[%s4273_s6 + $0xf0] sm:$0xff]  ;;  %v201_v22 = vld [vmem:[%s4273_s6 + $0xe8] sm:$0xff] }
   0xb   :  { %2468 = vmatmul.msk.f32.gmra.mxu0 %vm52_vm0, %v46_v5  ;;  %141 = vmatpush.msra.mxu2 %v85_v13  ;;  %v218_v21 = vld [vmem:[%s4273_s6 + $0x170] sm:$0xff]  ;;  %v217_v23 = vld [vmem:[%s4273_s6 + $0x168] sm:$0xff]  ;;  %v184_v24 = vld [vmem:[%s4273_s6 + $0x60] sm:$0xff] }
   0xc   :  { %164 = vmatpush.msra.mxu3 %v86_v14  ;;  %243 = vmatpush.msrb.mxu1 %v203_v17  ;;  %v200_v25 = vld [vmem:[%s4273_s6 + $0xe0] sm:$0xff]  ;;  %v183_v27 = vld [vmem:[%s4273_s6 + $0x58] sm:$0xff]  ;;  %v182_v30 = vld [vmem:[%s4273_s6 + $0x50] sm:$0xff] }
   0xd   :  { %266 = vmatpush.msrb.mxu2 %v219_v18  ;;  %221 = vmatpush.msrb.mxu0 %v186_v16  ;;  %v216_v26 = vld [vmem:[%s4273_s6 + $0x160] sm:$0xff]  ;;  %v199_v28 = vld [vmem:[%s4273_s6 + $0xd8] sm:$0xff]  ;;  %v198_v31 = vld [vmem:[%s4273_s6 + $0xd0] sm:$0xff] }
   0xe   :  { %244 = vmatpush.msrb.mxu1 %v202_v20  ;;  %v215_v29 = vld [vmem:[%s4273_s6 + $0x158] sm:$0xff]  ;;  %v214_v32 = vld [vmem:[%s4273_s6 + $0x150] sm:$0xff]  ;;  %v181_v33 = vld [vmem:[%s4273_s6 + $0x48] sm:$0xff] }
   0xf   :  { %267 = vmatpush.msrb.mxu2 %v218_v21  ;;  %222 = vmatpush.msrb.mxu0 %v185_v19  ;;  %v197_v34 = vld [vmem:[%s4273_s6 + $0xc8] sm:$0xff]  ;;  %v180_v36 = vld [vmem:[%s4273_s6 + $0x40] sm:$0xff]  ;;  %v179_v39 = vld [vmem:[%s4273_s6 + $0x38] sm:$0xff] }
  0x10   :  { %245 = vmatpush.msrb.mxu1 %v201_v22  ;;  %v213_v35 = vld [vmem:[%s4273_s6 + $0x148] sm:$0xff]  ;;  %v196_v37 = vld [vmem:[%s4273_s6 + $0xc0] sm:$0xff]  ;;  %v195_v41 = vld [vmem:[%s4273_s6 + $0xb8] sm:$0xff] }
  0x11   :  { %268 = vmatpush.msrb.mxu2 %v217_v23  ;;  %223 = vmatpush.msrb.mxu0 %v184_v24  ;;  %v212_v38 = vld [vmem:[%s4273_s6 + $0x140] sm:$0xff]  ;;  %v211_v42 = vld [vmem:[%s4273_s6 + $0x138] sm:$0xff]  ;;  %v178_v43 = vld [vmem:[%s4273_s6 + $0x30] sm:$0xff] }
  0x12   :  { %246 = vmatpush.msrb.mxu1 %v200_v25  ;;  %v2617_v40 = vld [vmem:[%s4270_s3] ss:$0 sm:$0xff]  ;;  %v194_v44 = vld [vmem:[%s4273_s6 + $0xb0] sm:$0xff]  ;;  %v177_v47 = vld [vmem:[%s4273_s6 + $0x28] sm:$0xff] }
  0x13   :  { %269 = vmatpush.msrb.mxu2 %v216_v26  ;;  %224 = vmatpush.msrb.mxu0 %v183_v27  ;;  %v210_v45 = vld [vmem:[%s4273_s6 + $0x130] sm:$0xff]  ;;  %v193_v49 = vld [vmem:[%s4273_s6 + $0xa8] sm:$0xff]  ;;  %v176_v52 = vld [vmem:[%s4273_s6 + $0x20] sm:$0xff] }
  0x14   :  { %247 = vmatpush.msrb.mxu1 %v199_v28  ;;  %v209_v50 = vld [vmem:[%s4273_s6 + $0x128] sm:$0xff]  ;;  %v192_v53 = vld [vmem:[%s4273_s6 + $0xa0] sm:$0xff]  ;;  %v175_v55 = vld [vmem:[%s4273_s6 + $0x18] sm:$0xff] }
  0x15   :  { %270 = vmatpush.msrb.mxu2 %v215_v29  ;;  %225 = vmatpush.msrb.mxu0 %v182_v30  ;;  %v208_v54 = vld [vmem:[%s4273_s6 + $0x120] sm:$0xff]  ;;  %v174_v56 = vld [vmem:[%s4273_s6 + $0x10] sm:$0xff]  ;;  %v173_v59 = vld [vmem:[%s4273_s6 + $0x8] sm:$0xff] }
  0x16   :  { %248 = vmatpush.msrb.mxu1 %v198_v31  ;;  %v172_v61 = vld [vmem:[%s4273_s6] sm:$0xff]  ;;  %v191_v62 = vld [vmem:[%s4273_s6 + $0x98] sm:$0xff]  ;;  %v190_v0 = vld [vmem:[%s4273_s6 + $0x90] sm:$0xff] }
  0x17   :  { %271 = vmatpush.msrb.mxu2 %v214_v32  ;;  %226 = vmatpush.msrb.mxu0 %v181_v33  ;;  %v207_v63 = vld [vmem:[%s4273_s6 + $0x118] sm:$0xff]  ;;  %v206_v1 = vld [vmem:[%s4273_s6 + $0x110] sm:$0xff]  ;;  %v189_v2 = vld [vmem:[%s4273_s6 + $0x88] sm:$0xff] }
  0x18   :  { %249 = vmatpush.msrb.mxu1 %v197_v34  ;;  %v205_v3 = vld [vmem:[%s4273_s6 + $0x108] sm:$0xff]  ;;  %v188_v4 = vld [vmem:[%s4273_s6 + $0x80] sm:$0xff]  ;;  %v291_v13 = vld [vmem:[%s4272_s5 + $0x10] sm:$0xff] }
  0x19   :  { %272 = vmatpush.msrb.mxu2 %v213_v35  ;;  %227 = vmatpush.msrb.mxu0 %v180_v36  ;;  %v204_v5 = vld [vmem:[%s4273_s6 + $0x100] sm:$0xff]  ;;  %v292_v14 = vld [vmem:[%s4272_s5 + $0x18] sm:$0xf]  ;;  %v294_v15 = vld [vmem:[%s4272_s5 + $0x28] sm:$0xf]  ;;  %s2455_s6 = sshll.u32 %s4280_s13, 4  ;;  %s2456_s6 = int_to_ptr.hbm [resolvable:$true] %s2455_s6 }
  0x1a   :  { %250 = vmatpush.msrb.mxu1 %v196_v37  ;;  %v289_v11 = vld [vmem:[%s4272_s5] sm:$0xff]  ;;  %v290_v16 = vld [vmem:[%s4272_s5 + $0x8] sm:$0xff]  ;;  %v366_v30 = vld [vmem:[%s4274_s7 + $0x10] sm:$0xff] }
  0x1b   :  { %273 = vmatpush.msrb.mxu2 %v212_v38  ;;  %228 = vmatpush.msrb.mxu0 %v179_v39  ;;  %v293_v17 = vld [vmem:[%s4272_s5 + $0x20] sm:$0xf]  ;;  %v365_v29 = vld [vmem:[%s4274_s7 + $0x8] sm:$0xff]  ;;  %v367_v32 = vld [vmem:[%s4274_s7 + $0x18] sm:$0xff] }
  0x1c   :  { %251 = vmatpush.msrb.mxu1 %v195_v41  ;;  %v364_v28 = vld [vmem:[%s4274_s7] sm:$0xff]  ;;  %v369_v37 = vld [vmem:[%s4274_s7 + $0x28] sm:$0xff] }
  0x1d   :  { %274 = vmatpush.msrb.mxu2 %v211_v42  ;;  %229 = vmatpush.msrb.mxu0 %v178_v43  ;;  %v368_v34 = vld [vmem:[%s4274_s7 + $0x20] sm:$0xff] }
  0x1e   :  { %252 = vmatpush.msrb.mxu1 %v194_v44  ;;  %v370_v44 = vld [vmem:[%s4274_s7 + $0x30] sm:$0xff] }
  0x1f   :  { %275 = vmatpush.msrb.mxu2 %v210_v45  ;;  %230 = vmatpush.msrb.mxu0 %v177_v47  ;;  %v550_v45 = vld [vmem:[%s4276_s9] sm:$0xff]  ;;  %v552_v47 = vld [vmem:[%s4276_s9 + $0x10] sm:$0xff] }
  0x20   :  { %253 = vmatpush.msrb.mxu1 %v193_v49  ;;  %v553_v49 = vld [vmem:[%s4276_s9 + $0x18] sm:$0xff] }
  0x21   :  { %276 = vmatpush.msrb.mxu2 %v209_v50  ;;  %231 = vmatpush.msrb.mxu0 %v176_v52  ;;  %v372_v50 = vld [vmem:[%s4274_s7 + $0x40] sm:$0xff] }
  0x22   :  { %254 = vmatpush.msrb.mxu1 %v192_v53  ;;  %v554_v52 = vld [vmem:[%s4276_s9 + $0x20] sm:$0xff]  ;;  %v373_v53 = vld [vmem:[%s4274_s7 + $0x48] sm:$0xff] }
  0x23   :  { %277 = vmatpush.msrb.mxu2 %v208_v54  ;;  %232 = vmatpush.msrb.mxu0 %v175_v55  ;;  %v555_v54 = vld [vmem:[%s4276_s9 + $0x28] sm:$0xff]  ;;  %v374_v55 = vld [vmem:[%s4274_s7 + $0x50] sm:$0xff] }
  0x24   :  { %255 = vmatpush.msrb.mxu1 %v191_v62 }
  0x25   :  { %233 = vmatpush.msrb.mxu0 %v174_v56  ;;  %278 = vmatpush.msrb.mxu2 %v207_v63 }
  0x26   :  { %256 = vmatpush.msrb.mxu1 %v190_v0 }
  0x27   :  { %234 = vmatpush.msrb.mxu0 %v173_v59  ;;  %279 = vmatpush.msrb.mxu2 %v206_v1  ;;  %v376_v1 = vld [vmem:[%s4274_s7 + $0x60] sm:$0xff] }
  0x28   :  { %257 = vmatpush.msrb.mxu1 %v189_v2 }
  0x29   :  { %235 = vmatpush.msrb.mxu0 %v172_v61  ;;  %280 = vmatpush.msrb.mxu2 %v205_v3  ;;  %v375_v61 = vld [vmem:[%s4274_s7 + $0x58] sm:$0xff] }
  0x2a   :  { %258 = vmatpush.msrb.mxu1 %v188_v4 }
  0x2b   :  { %281 = vmatpush.msrb.mxu2 %v204_v5  ;;  %v377_v5 = vld [vmem:[%s4274_s7 + $0x68] sm:$0xff] }
  0x80   :  { %v76_v46 = vpop.f32.mrf.mxu0 }
  0x81   :  { %v77_v48 = vadd.f32 %v2617_v40, %v76_v46  ;;  %v551_v46 = vld [vmem:[%s4276_s9 + $0x8] sm:$0xff] }
  0x83   :  { %v2961_v51 = vmax.f32 %v77_v48, 0.0  ;;  %v371_v48 = vld [vmem:[%s4274_s7 + $0x38] sm:$0xff] }
  0x85   :  { %2469 = vmatmul.msk.f32.vlgmr.msra.gmra.mxu1 %vm96_vm1, %v2961_v51  ;;  %2471 = vmatmul.msk.f32.vlgmr.msra.gmra.mxu2 %vm96_vm1, %v2961_v51 }
  0x86   :  { %2473 = vmatmul.msk.f32.vlgmr.msra.gmra.mxu3 %vm96_vm1, %v2961_v51 }
  0x88   :  { %v79_v57 = vpop.f32.mrf.mxu0 }
  0x89   :  { %v80_v58 = vadd.f32 %v2617_v40, %v79_v57  ;;  %v556_v57 = vld [vmem:[%s4276_s9 + $0x30] sm:$0xff] }
  0x8b   :  { %v2987_v60 = vmax.f32 %v80_v58, 0.0 }
  0x8d   :  { %2470 = vmatmul.msk.f32.gmra.mxu1 %vm96_vm1, %v2987_v60  ;;  %2472 = vmatmul.msk.f32.gmra.mxu2 %vm96_vm1, %v2987_v60 }
  0x8e   :  { %2474 = vmatmul.msk.f32.gmra.mxu3 %vm96_vm1, %v2987_v60 }
 0x102   :  { %v120_v6 = vpop.f32.mrf.mxu1 }
 0x103   :  { %236 = vmatmul.f32.vlgmr.msrb.gmra.mxu0 %v120_v6 }
 0x108   :  { %v143_v7 = vpop.f32.mrf.mxu2 }
 0x109   :  { %v166_v8 = vpop.f32.mrf.mxu3  ;;  %259 = vmatmul.f32.vlgmr.msrb.gmra.mxu1 %v143_v7 }
 0x10a   :  { %282 = vmatmul.f32.vlgmr.msrb.gmra.mxu2 %v166_v8  ;;  %v123_v9 = vpop.f32.mrf.mxu1 }
 0x10b   :  { %239 = vmatmul.f32.gmra.mxu0 %v123_v9  ;;  %309 = vmatpush.xpose.msrb.mxu3 %v123_v9 }
 0x10f   :  { %310 = vmatpush.xpose.msrb.mxu3 %v120_v6 }
 0x110   :  { %v146_v10 = vpop.f32.mrf.mxu2 }
 0x111   :  { %v169_v12 = vpop.f32.mrf.mxu3  ;;  %262 = vmatmul.f32.gmra.mxu1 %v146_v10 }
 0x112   :  { %285 = vmatmul.f32.gmra.mxu2 %v169_v12  ;;  %355 = vmatpush.xpose.msra.mxu0 %v169_v12 }
 0x113   :  { %332 = vmatpush.xpose.msra.mxu3 %v146_v10 }
 0x114   :  { %311 = vmatmul.f32.vlgmr.msrb.gmra.mxu3 %v289_v11 }
 0x116   :  { %356 = vmatpush.xpose.msra.mxu0 %v166_v8 }
 0x117   :  { %333 = vmatpush.xpose.msra.mxu3 %v143_v7 }
 0x119   :  { %357 = vmatmul.f32.vlgmr.msra.gmra.mxu0 %v291_v13  ;;  %v379_v13 = vld [vmem:[%s4274_s7 + $0x78] sm:$0xff] }
 0x11a   :  { %1755 = vmatpush.msrb.mxu0 %v146_v10  ;;  %v557_v10 = vld [vmem:[%s4276_s9 + $0x38] sm:$0xff] }
 0x11b   :  { %1666 = vmatpush.msrb.mxu3 %v123_v9 }
 0x11c   :  { %1756 = vmatpush.msrb.mxu0 %v143_v7  ;;  %314 = vmatmul.f32.gmra.mxu3 %v292_v14 }
 0x11d   :  { %1667 = vmatpush.msrb.mxu3 %v120_v6 }
 0x121   :  { %360 = vmatmul.f32.gmra.mxu0 %v294_v15 }
 0x124   :  { %334 = vmatmul.f32.vlgmr.msra.gmra.mxu3 %v290_v16 }
 0x12c   :  { %337 = vmatmul.f32.gmra.mxu3 %v293_v17  ;;  %v380_v17 = vld [vmem:[%s4274_s7 + $0x80] sm:$0xff] }
 0x180   :  { %v237_v19 = vpop.f32.mrf.mxu0 }
 0x186   :  { %v260_v18 = vpop.f32.mrf.mxu1 }
 0x187   :  { %v261_v25 = vadd.f32 %v260_v18, %v237_v19 }
 0x188   :  { %v240_v22 = vpop.f32.mrf.mxu0 }
 0x18d   :  { %v283_v20 = vpop.f32.mrf.mxu2 }
 0x18e   :  { %v263_v21 = vpop.f32.mrf.mxu1  ;;  %v284_v27 = vadd.f32 %v283_v20, %v261_v25  ;;  %v559_v25 = vld [vmem:[%s4276_s9 + $0x48] sm:$0xff] }
 0x18f   :  { %v264_v23 = vadd.f32 %v263_v21, %v240_v22  ;;  %v381_v21 = vld [vmem:[%s4274_s7 + $0x88] sm:$0xff] }
 0x195   :  { %v286_v24 = vpop.f32.mrf.mxu2 }
 0x196   :  { %v287_v26 = vadd.f32 %v286_v24, %v264_v23  ;;  %v358_v35 = vpop.f32.mrf.mxu0  ;;  %v382_v23 = vld [vmem:[%s4274_s7 + $0x90] sm:$0xff]  ;;  %v558_v24 = vld [vmem:[%s4276_s9 + $0x40] sm:$0xff] }
 0x197   :  { %v312_v31 = vpop.f32.mrf.mxu3 }
 0x198   :  { %475 = vmatpush.msra.mxu1 %v287_v26 }
 0x19a   :  { %476 = vmatpush.msra.mxu1 %v284_v27 }
 0x19b   :  { %2475 = vmatmul.msk.f32.vlgmr.msra.gmra.mxu1 %vm388_vm2, %v364_v28  ;;  %v3166_v28 = vld [vmem:[%s4276_s9 + $0x50] sm:$0xff] }
 0x19c   :  { %1844 = vmatpush.msrb.mxu1 %v169_v12 }
 0x19e   :  { %1845 = vmatpush.msrb.mxu1 %v166_v8  ;;  %v361_v40 = vpop.f32.mrf.mxu0  ;;  %v378_v8 = vld [vmem:[%s4274_s7 + $0x70] sm:$0xff] }
 0x19f   :  { %v315_v33 = vpop.f32.mrf.mxu3 }
 0x1a3   :  { %2476 = vmatmul.msk.f32.gmra.mxu1 %vm388_vm2, %v365_v29 }
 0x1a7   :  { %v335_v36 = vpop.f32.mrf.mxu3 }
 0x1a8   :  { %v336_v38 = vadd.f32 %v335_v36, %v312_v31  ;;  %v3183_v36 = vld [vmem:[%s4276_s9 + $0x60] sm:$0xff] }
 0x1aa   :  { %v359_v42 = vadd.f32 %v358_v35, %v336_v38 }
 0x1ab   :  { %2477 = vmatmul.msk.f32.gmra.mxu1 %vm388_vm2, %v366_v30  ;;  %v3173_v30 = vld [vmem:[%s4276_s9 + $0x58] sm:$0xff] }
 0x1af   :  { %v338_v39 = vpop.f32.mrf.mxu3 }
 0x1b0   :  { %v339_v41 = vadd.f32 %v338_v39, %v315_v33  ;;  %v932_v33 = vld [vmem:[%s4268_s1] sm:$0xff] }
 0x1b1   :  { %vm956_vm6 = vcmp.gt.f32.partialorder %v932_v33, 0.0 }
 0x1b2   :  { %v362_v43 = vadd.f32 %v361_v40, %v339_v41 }
 0x1b3   :  { %2478 = vmatmul.msk.f32.gmra.mxu1 %vm388_vm2, %v367_v32 }
 0x1b4   :  { %2499 = vmatpush.msk.msra.mxu2 %vm743_vm3, %v362_v43  ;;  %v933_v43 = vld [vmem:[%s4268_s1 + $0x8] sm:$0xff] }
 0x1b5   :  { %vm957_vm8 = vcmp.gt.f32.partialorder %v933_v43, 0.0 }
 0x1b6   :  { %762 = vmatpush.msra.mxu2 %v359_v42 }
 0x1b7   :  { %2500 = vmatmul.msk.f32.vlgmr.msra.gmra.mxu2 %vm598_vm4, %v550_v45 }
 0x1bb   :  { %2479 = vmatmul.msk.f32.gmra.mxu1 %vm388_vm2, %v368_v34 }
 0x1bf   :  { %2501 = vmatmul.msk.f32.gmra.mxu2 %vm598_vm4, %v551_v46 }
 0x1c3   :  { %2480 = vmatmul.msk.f32.gmra.mxu1 %vm388_vm2, %v369_v37 }
 0x1c7   :  { %2502 = vmatmul.msk.f32.gmra.mxu2 %vm598_vm4, %v552_v47 }
 0x1cb   :  { %2481 = vmatmul.msk.f32.gmra.mxu1 %vm388_vm2, %v370_v44 }
 0x1cf   :  { %2503 = vmatmul.msk.f32.gmra.mxu2 %vm598_vm4, %v553_v49 }
 0x1d3   :  { %2482 = vmatmul.msk.f32.gmra.mxu1 %vm388_vm2, %v371_v48 }
 0x1d7   :  { %2504 = vmatmul.msk.f32.gmra.mxu2 %vm598_vm4, %v554_v52 }
 0x1db   :  { %2483 = vmatmul.msk.f32.gmra.mxu1 %vm388_vm2, %v372_v50 }
 0x1df   :  { %2505 = vmatmul.msk.f32.gmra.mxu2 %vm598_vm4, %v555_v54 }
 0x1e3   :  { %2484 = vmatmul.msk.f32.gmra.mxu1 %vm388_vm2, %v373_v53 }
 0x1e7   :  { %2506 = vmatmul.msk.f32.gmra.mxu2 %vm598_vm4, %v556_v57 }
 0x1eb   :  { %2485 = vmatmul.msk.f32.gmra.mxu1 %vm388_vm2, %v374_v55 }
 0x1ef   :  { %2507 = vmatmul.msk.f32.gmra.mxu2 %vm598_vm4, %v557_v10 }
 0x1f3   :  { %2486 = vmatmul.msk.f32.gmra.mxu1 %vm388_vm2, %v375_v61  ;;  %v383_v61 = vld [vmem:[%s4274_s7 + $0x98] sm:$0xff] }
 0x1f7   :  { %2508 = vmatmul.msk.f32.gmra.mxu2 %vm598_vm4, %v558_v24 }
 0x1fb   :  { %2487 = vmatmul.msk.f32.gmra.mxu1 %vm388_vm2, %v376_v1 }
 0x1ff   :  { %2509 = vmatmul.msk.f32.gmra.mxu2 %vm598_vm4, %v559_v25 }
 0x203   :  { %2488 = vmatmul.msk.f32.gmra.mxu1 %vm388_vm2, %v377_v5 }
 0x207   :  { %2510 = vmatmul.msk.f32.gmra.mxu2 %vm598_vm4, %v3166_v28 }
 0x20b   :  { %2489 = vmatmul.msk.f32.gmra.mxu1 %vm388_vm2, %v378_v8  ;;  %v384_v8 = vld [vmem:[%s4274_s7 + $0xa0] sm:$0xff] }
 0x20f   :  { %2511 = vmatmul.msk.f32.gmra.mxu2 %vm598_vm4, %v3173_v30 }
 0x213   :  { %2490 = vmatmul.msk.f32.gmra.mxu1 %vm388_vm2, %v379_v13 }
 0x217   :  { %2512 = vmatmul.msk.f32.gmra.mxu2 %vm598_vm4, %v3183_v36 }
 0x218   :  { %v478_v56 = vpop.f32.mrf.mxu1 }
 0x219   :  { %v574_v58 = vmul.f32 %v550_v45, %v478_v56  ;;  %v934_v56 = vld [vmem:[%s4268_s1 + $0x10] sm:$0xff] }
 0x21a   :  { %vm958_vm10 = vcmp.gt.f32.partialorder %v934_v56, 0.0 }
 0x21b   :  { %v599_v59 = vsel %vm598_vm4, %v574_v58, 0.0  ;;  %2491 = vmatmul.msk.f32.gmra.mxu1 %vm388_vm2, %v380_v17  ;;  %v936_v17 = vld [vmem:[%s4268_s1 + $0x20] sm:$0xff] }
 0x21c   :  { %600 = vadd.xlane.f32.xlu0 %v599_v59  ;;  %vm960_vm14 = vcmp.gt.f32.partialorder %v936_v17, 0.0 }
 0x220   :  { %v481_v62 = vpop.f32.mrf.mxu1 }
 0x221   :  { %v575_v63 = vmul.f32 %v551_v46, %v481_v62  ;;  %v3215_v62 = vld [vmem:[%s4276_s9 + $0x70] sm:$0xff] }
 0x223   :  { %v602_v0 = vsel %vm598_vm4, %v575_v63, 0.0  ;;  %2492 = vmatmul.msk.f32.gmra.mxu1 %vm388_vm2, %v381_v21  ;;  %v566_v21 = vld [vmem:[%s4276_s9 + $0x80] sm:$0xff] }
 0x224   :  { %603 = vadd.xlane.f32.xlu0 %v602_v0 }
 0x228   :  { %v484_v2 = vpop.f32.mrf.mxu1 }
 0x229   :  { %v576_v3 = vmul.f32 %v552_v47, %v484_v2  ;;  %v3197_v47 = vld [vmem:[%s4276_s9 + $0x68] sm:$0xff] }
 0x22a   :  { %2513 = vmatmul.msk.f32.gmra.mxu2 %vm598_vm4, %v3197_v47 }
 0x22b   :  { %v605_v4 = vsel %vm598_vm4, %v576_v3, 0.0  ;;  %2493 = vmatmul.msk.f32.gmra.mxu1 %vm388_vm2, %v382_v23 }
 0x22c   :  { %606 = vadd.xlane.f32.xlu1 %v605_v4  ;;  %v935_v4 = vld [vmem:[%s4268_s1 + $0x18] sm:$0xff] }
 0x22d   :  { %vm959_vm12 = vcmp.gt.f32.partialorder %v935_v4, 0.0 }
 0x230   :  { %v487_v6 = vpop.f32.mrf.mxu1 }
 0x231   :  { %v577_v7 = vmul.f32 %v553_v49, %v487_v6 }
 0x232   :  { %2514 = vmatmul.msk.f32.gmra.mxu2 %vm598_vm4, %v3215_v62 }
 0x233   :  { %v608_v9 = vsel %vm598_vm4, %v577_v7, 0.0  ;;  %2494 = vmatmul.msk.f32.gmra.mxu1 %vm388_vm2, %v383_v61 }
 0x234   :  { %609 = vadd.xlane.f32.xlu1 %v608_v9  ;;  %v3234_v9 = vld [vmem:[%s4276_s9 + $0x78] sm:$0xff] }
 0x238   :  { %v490_v11 = vpop.f32.mrf.mxu1 }
 0x239   :  { %v578_v12 = vmul.f32 %v554_v52, %v490_v11 }
 0x23a   :  { %v764_v27 = vpop.f32.mrf.mxu2  ;;  %2515 = vmatmul.msk.f32.gmra.mxu2 %vm598_vm4, %v3234_v9 }
 0x23b   :  { %v611_v14 = vsel %vm598_vm4, %v578_v12, 0.0  ;;  %2495 = vmatmul.msk.f32.gmra.mxu1 %vm388_vm2, %v384_v8 }
 0x23c   :  { %612 = vadd.xlane.f32.xlu2 %v611_v14 }
 0x240   :  { %v493_v15 = vpop.f32.mrf.mxu1 }
 0x241   :  { %v579_v16 = vmul.f32 %v555_v54, %v493_v15 }
 0x242   :  { %v767_v31 = vpop.f32.mrf.mxu2  ;;  %2516 = vmatmul.msk.f32.gmra.mxu2 %vm598_vm4, %v566_v21 }
 0x243   :  { %v614_v18 = vsel %vm598_vm4, %v579_v16, 0.0 }
 0x244   :  { %615 = vadd.xlane.f32.xlu2 %v614_v18 }
 0x248   :  { %v496_v19 = vpop.f32.mrf.mxu1 }
 0x249   :  { %v580_v20 = vmul.f32 %v556_v57, %v496_v19 }
 0x24a   :  { %v770_v40 = vpop.f32.mrf.mxu2 }
 0x24b   :  { %v617_v22 = vsel %vm598_vm4, %v580_v20, 0.0  ;;  %v385_v20 = vld [vmem:[%s4274_s7 + $0xa8] sm:$0xff] }
 0x24c   :  { %618 = vadd.xlane.f32.xlu1 %v617_v22  ;;  %2496 = vmatmul.msk.f32.gmra.mxu1 %vm388_vm2, %v385_v20 }
 0x250   :  { %v499_v26 = vpop.f32.mrf.mxu1 }
 0x251   :  { %v581_v45 = vmul.f32 %v557_v10, %v499_v26 }
 0x252   :  { %v773_v55 = vpop.f32.mrf.mxu2 }
 0x253   :  { %v620_v49 = vsel %vm598_vm4, %v581_v45, 0.0  ;;  %v938_v45 = vld [vmem:[%s4268_s1 + $0x30] sm:$0xff] }
 0x258   :  { %v502_v29 = vpop.f32.mrf.mxu1 }
 0x259   :  { %v582_v58 = vmul.f32 %v558_v24, %v502_v29 }
 0x25a   :  { %v776_v10 = vpop.f32.mrf.mxu2 }
 0x25b   :  { %v623_v0 = vsel %vm598_vm4, %v582_v58, 0.0 }
 0x260   :  { %v505_v37 = vpop.f32.mrf.mxu1 }
 0x261   :  { %v583_v7 = vmul.f32 %v559_v25, %v505_v37 }
 0x262   :  { %v779_v24 = vpop.f32.mrf.mxu2 }
 0x263   :  { %v626_v13 = vsel %vm598_vm4, %v583_v7, 0.0 }
 0x268   :  { %v508_v52 = vpop.f32.mrf.mxu1 }
 0x269   :  { %v584_v19 = vmul.f32 %v3166_v28, %v508_v52  ;;  %v568_v52 = vld [vmem:[%s4276_s9 + $0x90] sm:$0xff] }
 0x26b   :  { %v629_v26 = vsel %vm598_vm4, %v584_v19, 0.0 }
 0x270   :  { %v511_v5 = vpop.f32.mrf.mxu1 }
 0x271   :  { %v585_v33 = vmul.f32 %v3173_v30, %v511_v5  ;;  %v782_v30 = vpop.f32.mrf.mxu2 }
 0x278   :  { %v514_v22 = vpop.f32.mrf.mxu1 }
 0x28f   :  { %v601_v32 = vpop.xlane.xlu0 %600 }
 0x290   :  { %v836_v34 = vadd.f32 %v764_v27, %v601_v32 }
 0x292   :  { %v884_v35 = vmul.f32 0.2, %v836_v34  ;;  %vm860_vm5 = vcmp.gt.f32.partialorder %v836_v34, 0.0 }
 0x294   :  { %v908_v38 = vsel %vm860_vm5, %v836_v34, %v884_v35  ;;  %v386_v34 = vld [vmem:[%s4274_s7 + $0xb0] sm:$0xff]  ;;  %v567_v35 = vld [vmem:[%s4276_s9 + $0x88] sm:$0xff]  ;;  %vm962_vm5 = vcmp.gt.f32.partialorder %v938_v45, 0.0 }
 0x295   :  { %v3187_v39 = vsel %vm956_vm6, %v908_v38, -1e+30  ;;  %v517_v38 = vpop.f32.mrf.mxu1  ;;  %2497 = vmatmul.msk.f32.gmra.mxu1 %vm388_vm2, %v386_v34  ;;  %2517 = vmatmul.msk.f32.gmra.mxu2 %vm598_vm4, %v567_v35 }
 0x296   :  { %v1004_v41 = vsel %vm388_vm2, %v3187_v39, -inf  ;;  %v587_v58 = vmul.f32 %v3197_v47, %v517_v38 }
 0x297   :  { %1005 = vmax.xlane.f32.xlu0 %v1004_v41  ;;  %v604_v42 = vpop.xlane.xlu0 %603  ;;  %v632_v41 = vsel %vm598_vm4, %v585_v33, 0.0 }
 0x298   :  { %v837_v44 = vadd.f32 %v767_v31, %v604_v42  ;;  %v937_v31 = vld [vmem:[%s4268_s1 + $0x28] sm:$0xff] }
 0x299   :  { %vm961_vm0 = vcmp.gt.f32.partialorder %v937_v31, 0.0 }
 0x29a   :  { %v885_v46 = vmul.f32 0.2, %v837_v44  ;;  %vm861_vm7 = vcmp.gt.f32.partialorder %v837_v44, 0.0 }
 0x29c   :  { %v909_v48 = vsel %vm861_vm7, %v837_v44, %v885_v46 }
 0x29d   :  { %v3202_v50 = vsel %vm957_vm8, %v909_v48, -1e+30  ;;  %v586_v48 = vmul.f32 %v3183_v36, %v514_v22  ;;  %2518 = vmatmul.msk.f32.gmra.mxu2 %vm598_vm4, %v568_v52  ;;  %v520_v36 = vpop.f32.mrf.mxu1 }
 0x29e   :  { %v1007_v53 = vsel %vm388_vm2, %v3202_v50, -inf }
 0x29f   :  { %v607_v54 = vpop.xlane.xlu1 %606  ;;  %1008 = vmax.xlane.f32.xlu2 %v1007_v53  ;;  %621 = vadd.xlane.f32.xlu0 %v620_v49  ;;  %v387_v49 = vld [vmem:[%s4274_s7 + $0xb8] sm:$0xff] }
 0x2a0   :  { %v838_v57 = vadd.f32 %v770_v40, %v607_v54  ;;  %2498 = vmatmul.msk.f32.gmra.mxu1 %vm388_vm2, %v387_v49 }
 0x2a2   :  { %v886_v59 = vmul.f32 0.2, %v838_v57  ;;  %vm862_vm9 = vcmp.gt.f32.partialorder %v838_v57, 0.0 }
 0x2a4   :  { %v910_v63 = vsel %vm862_vm9, %v838_v57, %v886_v59  ;;  %v638_v59 = vsel %vm598_vm4, %v587_v58, 0.0 }
 0x2a5   :  { %v3221_v1 = vsel %vm958_vm10, %v910_v63, -1e+30  ;;  %v523_v61 = vpop.f32.mrf.mxu1  ;;  %v588_v63 = vmul.f32 %v3215_v62, %v520_v36 }
 0x2a6   :  { %v1010_v2 = vsel %vm388_vm2, %v3221_v1, -inf }
 0x2a7   :  { %v610_v3 = vpop.xlane.xlu1 %609  ;;  %1011 = vmax.xlane.f32.xlu1 %v1010_v2  ;;  %624 = vadd.xlane.f32.xlu2 %v623_v0  ;;  %v641_v0 = vsel %vm598_vm4, %v588_v63, 0.0  ;;  %v589_v2 = vmul.f32 %v3234_v9, %v523_v61  ;;  %v571_v61 = vld [vmem:[%s4276_s9 + $0xa8] sm:$0xff] }
 0x2a8   :  { %v839_v6 = vadd.f32 %v773_v55, %v610_v3  ;;  %v635_v55 = vsel %vm598_vm4, %v586_v48, 0.0  ;;  %v941_v48 = vld [vmem:[%s4268_s1 + $0x48] sm:$0xff] }
 0x2a9   :  { %v644_v4 = vsel %vm598_vm4, %v589_v2, 0.0  ;;  %vm965_vm10 = vcmp.gt.f32.partialorder %v941_v48, 0.0 }
 0x2aa   :  { %v887_v11 = vmul.f32 0.2, %v839_v6  ;;  %vm863_vm11 = vcmp.gt.f32.partialorder %v839_v6, 0.0 }
 0x2ac   :  { %v911_v12 = vsel %vm863_vm11, %v839_v6, %v887_v11 }
 0x2ad   :  { %v3240_v14 = vsel %vm959_vm12, %v911_v12, -1e+30  ;;  %v526_v3 = vpop.f32.mrf.mxu1  ;;  %v785_v12 = vpop.f32.mrf.mxu2 }
 0x2ae   :  { %v1013_v15 = vsel %vm388_vm2, %v3240_v14, -inf  ;;  %v590_v5 = vmul.f32 %v566_v21, %v526_v3 }
 0x2af   :  { %v613_v16 = vpop.xlane.xlu2 %612  ;;  %1014 = vmax.xlane.f32.xlu0 %v1013_v15  ;;  %627 = vadd.xlane.f32.xlu1 %v626_v13 }
 0x2b0   :  { %v840_v18 = vadd.f32 %v776_v10, %v613_v16  ;;  %v647_v7 = vsel %vm598_vm4, %v590_v5, 0.0  ;;  %v942_v5 = vld [vmem:[%s4268_s1 + $0x50] sm:$0xff] }
 0x2b1   :  { %vm966_vm12 = vcmp.gt.f32.partialorder %v942_v5, 0.0 }
 0x2b2   :  { %v888_v23 = vmul.f32 0.2, %v840_v18  ;;  %vm864_vm13 = vcmp.gt.f32.partialorder %v840_v18, 0.0 }
 0x2b4   :  { %v912_v25 = vsel %vm864_vm13, %v840_v18, %v888_v23  ;;  %v939_v18 = vld [vmem:[%s4268_s1 + $0x38] sm:$0xff] }
 0x2b5   :  { %v3257_v27 = vsel %vm960_vm14, %v912_v25, -1e+30  ;;  %v529_v6 = vpop.f32.mrf.mxu1  ;;  %v788_v9 = vpop.f32.mrf.mxu2  ;;  %vm963_vm6 = vcmp.gt.f32.partialorder %v939_v18, 0.0 }
 0x2b6   :  { %v1016_v28 = vsel %vm388_vm2, %v3257_v27, -inf  ;;  %v591_v47 = vmul.f32 %v567_v35, %v529_v6 }
 0x2b7   :  { %v616_v29 = vpop.xlane.xlu2 %615  ;;  %1017 = vmax.xlane.f32.xlu2 %v1016_v28  ;;  %630 = vadd.xlane.f32.xlu0 %v629_v26 }
 0x2b8   :  { %v841_v32 = vadd.f32 %v779_v24, %v616_v29  ;;  %v650_v8 = vsel %vm598_vm4, %v591_v47, 0.0 }
 0x2ba   :  { %v889_v37 = vmul.f32 0.2, %v841_v32  ;;  %vm865_vm15 = vcmp.gt.f32.partialorder %v841_v32, 0.0 }
 0x2bc   :  { %v913_v40 = vsel %vm865_vm15, %v841_v32, %v889_v37  ;;  %v940_v32 = vld [vmem:[%s4268_s1 + $0x40] sm:$0xff] }
 0x2bd   :  { %v3274_v42 = vsel %vm961_vm0, %v913_v40, -1e+30  ;;  %v532_v10 = vpop.f32.mrf.mxu1  ;;  %v791_v17 = vpop.f32.mrf.mxu2  ;;  %vm964_vm8 = vcmp.gt.f32.partialorder %v940_v32, 0.0 }
 0x2be   :  { %v1019_v43 = vsel %vm388_vm2, %v3274_v42, -inf  ;;  %v592_v62 = vmul.f32 %v568_v52, %v532_v10 }
 0x2bf   :  { %v619_v44 = vpop.xlane.xlu1 %618  ;;  %1020 = vmax.xlane.f32.xlu1 %v1019_v43  ;;  %633 = vadd.xlane.f32.xlu2 %v632_v41 }
 0x2c0   :  { %v842_v46 = vadd.f32 %v782_v30, %v619_v44  ;;  %v653_v11 = vsel %vm598_vm4, %v592_v62, 0.0  ;;  %v570_v30 = vld [vmem:[%s4276_s9 + $0xa0] sm:$0xff] }
 0x2c2   :  { %v890_v53 = vmul.f32 0.2, %v842_v46  ;;  %vm866_vm3 = vcmp.gt.f32.partialorder %v842_v46, 0.0 }
 0x2c4   :  { %v914_v54 = vsel %vm866_vm3, %v842_v46, %v890_v53 }
 0x2c5   :  { %v3291_v56 = vsel %vm962_vm5, %v914_v54, -1e+30  ;;  %v535_v45 = vpop.f32.mrf.mxu1 }
 0x2c6   :  { %v1022_v57 = vsel %vm388_vm2, %v3291_v56, -inf }
 0x2c7   :  { %1023 = vmax.xlane.f32.xlu0 %v1022_v57  ;;  %636 = vadd.xlane.f32.xlu1 %v635_v55 }
 0x2cd   :  { %v538_v3 = vpop.f32.mrf.mxu1 }
 0x2ce   :  { %v594_v47 = vmul.f32 %v570_v30, %v538_v3 }
 0x2cf   :  { %639 = vadd.xlane.f32.xlu1 %v638_v59 }
 0x2d5   :  { %v541_v18 = vpop.f32.mrf.mxu1 }
 0x2d7   :  { %642 = vadd.xlane.f32.xlu1 %v641_v0 }
 0x2df   :  { %645 = vadd.xlane.f32.xlu1 %v644_v4 }
 0x2e7   :  { %648 = vadd.xlane.f32.xlu1 %v647_v7 }
 0x2ef   :  { %651 = vadd.xlane.f32.xlu1 %v650_v8 }
 0x2f7   :  { %654 = vadd.xlane.f32.xlu1 %v653_v11 }
 0x30a   :  { %v1006_v13 = vpop.xlane.xlu0 %1005 }
 0x30b   :  { %v1076_v15 = vsub.f32 %v3187_v39, %v1006_v13  ;;  %v569_v39 = vld [vmem:[%s4276_s9 + $0x98] sm:$0xff]  ;;  %v572_v13 = vld [vmem:[%s4276_s9 + $0xb0] sm:$0xff] }
 0x30c   :  { %2519 = vmatmul.msk.f32.gmra.mxu2 %vm598_vm4, %v569_v39  ;;  %v593_v54 = vmul.f32 %v569_v39, %v535_v45 }
 0x30d   :  { %v1100_v16 = vmul.f32 1.442695, %v1076_v15 }
 0x30e   :  { %v656_v0 = vsel %vm598_vm4, %v593_v54, 0.0 }
 0x30f   :  { %2619 = vpow2.f32 %v1100_v16  ;;  %657 = vadd.xlane.f32.xlu1 %v656_v0  ;;  %v659_v16 = vsel %vm598_vm4, %v594_v47, 0.0  ;;  %v945_v0 = vld [vmem:[%s4268_s1 + $0x68] sm:$0xff] }
 0x312   :  { %v1009_v19 = vpop.xlane.xlu2 %1008  ;;  %v622_v20 = vpop.xlane.xlu0 %621 }
 0x313   :  { %v1077_v21 = vsub.f32 %v3202_v50, %v1009_v19  ;;  %v843_v22 = vadd.f32 %v785_v12, %v622_v20  ;;  %v794_v50 = vpop.f32.mrf.mxu2  ;;  %v943_v20 = vld [vmem:[%s4268_s1 + $0x58] sm:$0xff] }
 0x314   :  { %2520 = vmatmul.msk.f32.gmra.mxu2 %vm598_vm4, %v570_v30  ;;  %vm967_vm14 = vcmp.gt.f32.partialorder %v943_v20, 0.0 }
 0x315   :  { %v3309_v23 = vpop.eup %2619  ;;  %v1102_v24 = vmul.f32 1.442695, %v1077_v21  ;;  %v891_v25 = vmul.f32 0.2, %v843_v22  ;;  %vm867_vm7 = vcmp.gt.f32.partialorder %v843_v22, 0.0 }
 0x316   :  { %v1148_v26 = vsel %vm388_vm2, %v3309_v23, 0.0 }
 0x317   :  { %2621 = vpow2.f32 %v1102_v24  ;;  %1149 = vadd.xlane.f32.xlu2 %v1148_v26  ;;  %v915_v28 = vsel %vm867_vm7, %v843_v22, %v891_v25  ;;  %660 = vadd.xlane.f32.xlu1 %v659_v16  ;;  %v595_v24 = vmul.f32 %v571_v61, %v541_v18 }
 0x318   :  { %v3317_v29 = vsel %vm963_vm6, %v915_v28, -1e+30  ;;  %vm969_vm6 = vcmp.gt.f32.partialorder %v945_v0, 0.0 }
 0x319   :  { %v1025_v31 = vsel %vm388_vm2, %v3317_v29, -inf }
 0x31a   :  { %v1012_v33 = vpop.xlane.xlu1 %1011  ;;  %v625_v34 = vpop.xlane.xlu2 %624  ;;  %1026 = vmax.xlane.f32.xlu0 %v1025_v31  ;;  %v573_v31 = vld [vmem:[%s4276_s9 + $0xb8] sm:$0xff] }
 0x31b   :  { %v1078_v35 = vsub.f32 %v3221_v1, %v1012_v33  ;;  %v844_v37 = vadd.f32 %v788_v9, %v625_v34  ;;  %v797_v49 = vpop.f32.mrf.mxu2  ;;  %v662_v34 = vsel %vm598_vm4, %v595_v24, 0.0 }
 0x31c   :  { %2521 = vmatmul.msk.f32.gmra.mxu2 %vm598_vm4, %v571_v61 }
 0x31d   :  { %v3325_v38 = vpop.eup %2621  ;;  %v1104_v40 = vmul.f32 1.442695, %v1078_v35  ;;  %v892_v41 = vmul.f32 0.2, %v844_v37  ;;  %vm868_vm9 = vcmp.gt.f32.partialorder %v844_v37, 0.0 }
 0x31e   :  { %v1151_v43 = vsel %vm388_vm2, %v3325_v38, 0.0 }
 0x31f   :  { %2623 = vpow2.f32 %v1104_v40  ;;  %1152 = vadd.xlane.f32.xlu2 %v1151_v43  ;;  %v916_v44 = vsel %vm868_vm9, %v844_v37, %v892_v41  ;;  %663 = vadd.xlane.f32.xlu1 %v662_v34  ;;  %v544_v37 = vpop.f32.mrf.mxu1  ;;  %v944_v41 = vld [vmem:[%s4268_s1 + $0x60] sm:$0xff] }
 0x320   :  { %v3333_v1 = vsel %vm964_vm8, %v916_v44, -1e+30  ;;  %v596_v30 = vmul.f32 %v572_v13, %v544_v37  ;;  %vm968_vm0 = vcmp.gt.f32.partialorder %v944_v41, 0.0  ;;  %v949_v41 = vld [vmem:[%s4268_s1 + $0x88] sm:$0xff] }
 0x321   :  { %v1028_v46 = vsel %vm388_vm2, %v3333_v1, -inf }
 0x322   :  { %v1015_v52 = vpop.xlane.xlu0 %1014  ;;  %v628_v53 = vpop.xlane.xlu1 %627  ;;  %1029 = vmax.xlane.f32.xlu0 %v1028_v46 }
 0x323   :  { %v1079_v55 = vsub.f32 %v3240_v14, %v1015_v52  ;;  %v845_v36 = vadd.f32 %v791_v17, %v628_v53  ;;  %v800_v62 = vpop.f32.mrf.mxu2  ;;  %v665_v53 = vsel %vm598_vm4, %v596_v30, 0.0 }
 0x324   :  { %2522 = vmatmul.msk.f32.gmra.mxu2 %vm598_vm4, %v572_v13 }
 0x325   :  { %v3341_v57 = vpop.eup %2623  ;;  %v1106_v58 = vmul.f32 1.442695, %v1079_v55  ;;  %v893_v59 = vmul.f32 0.2, %v845_v36  ;;  %vm869_vm11 = vcmp.gt.f32.partialorder %v845_v36, 0.0 }
 0x326   :  { %v1154_v63 = vsel %vm388_vm2, %v3341_v57, 0.0 }
 0x327   :  { %2625 = vpow2.f32 %v1106_v58  ;;  %1155 = vadd.xlane.f32.xlu2 %v1154_v63  ;;  %v917_v14 = vsel %vm869_vm11, %v845_v36, %v893_v59  ;;  %666 = vadd.xlane.f32.xlu1 %v665_v53  ;;  %v950_v53 = vld [vmem:[%s4268_s1 + $0x90] sm:$0xff] }
 0x328   :  { %v3350_v2 = vsel %vm965_vm10, %v917_v14, -1e+30 }
 0x329   :  { %v1031_v4 = vsel %vm388_vm2, %v3350_v2, -inf }
 0x32a   :  { %v1018_v6 = vpop.xlane.xlu2 %1017  ;;  %1032 = vmax.xlane.f32.xlu0 %v1031_v4  ;;  %v631_v7 = vpop.xlane.xlu0 %630 }
 0x32b   :  { %v1080_v8 = vsub.f32 %v3257_v27, %v1018_v6  ;;  %v846_v10 = vadd.f32 %v794_v50, %v631_v7  ;;  %v803_v33 = vpop.f32.mrf.mxu2 }
 0x32c   :  { %2523 = vmatmul.msk.f32.gmra.mxu2 %vm598_vm4, %v573_v31 }
 0x32d   :  { %v3358_v11 = vpop.eup %2625  ;;  %v1108_v12 = vmul.f32 1.442695, %v1080_v8  ;;  %v894_v9 = vmul.f32 0.2, %v846_v10  ;;  %vm870_vm13 = vcmp.gt.f32.partialorder %v846_v10, 0.0 }
 0x32e   :  { %v1157_v15 = vsel %vm388_vm2, %v3358_v11, 0.0 }
 0x32f   :  { %2627 = vpow2.f32 %v1108_v12  ;;  %1158 = vadd.xlane.f32.xlu2 %v1157_v15  ;;  %v918_v27 = vsel %vm870_vm13, %v846_v10, %v894_v9  ;;  %v946_v12 = vld [vmem:[%s4268_s1 + $0x70] sm:$0xff]  ;;  %vm973_vm13 = vcmp.gt.f32.partialorder %v949_v41, 0.0 }
 0x330   :  { %v3367_v17 = vsel %vm966_vm12, %v918_v27, -1e+30  ;;  %vm970_vm7 = vcmp.gt.f32.partialorder %v946_v12, 0.0 }
 0x331   :  { %v1034_v19 = vsel %vm388_vm2, %v3367_v17, -inf }
 0x332   :  { %v1021_v21 = vpop.xlane.xlu1 %1020  ;;  %1035 = vmax.xlane.f32.xlu0 %v1034_v19  ;;  %v634_v22 = vpop.xlane.xlu2 %633  ;;  %v947_v19 = vld [vmem:[%s4268_s1 + $0x78] sm:$0xff] }
 0x333   :  { %v1081_v25 = vsub.f32 %v3274_v42, %v1021_v21  ;;  %v847_v39 = vadd.f32 %v797_v49, %v634_v22  ;;  %v806_v58 = vpop.f32.mrf.mxu2  ;;  %vm971_vm9 = vcmp.gt.f32.partialorder %v947_v19, 0.0 }
 0x335   :  { %v3375_v26 = vpop.eup %2627  ;;  %v1110_v28 = vmul.f32 1.442695, %v1081_v25  ;;  %v895_v50 = vmul.f32 0.2, %v847_v39  ;;  %vm871_vm15 = vcmp.gt.f32.partialorder %v847_v39, 0.0 }
 0x336   :  { %v1160_v32 = vsel %vm388_vm2, %v3375_v26, 0.0 }
 0x337   :  { %2629 = vpow2.f32 %v1110_v28  ;;  %1161 = vadd.xlane.f32.xlu2 %v1160_v32  ;;  %v919_v42 = vsel %vm871_vm15, %v847_v39, %v895_v50  ;;  %v948_v50 = vld [vmem:[%s4268_s1 + $0x80] sm:$0xff]  ;;  %vm974_vm15 = vcmp.gt.f32.partialorder %v950_v53, 0.0 }
 0x338   :  { %v3384_v35 = vsel %vm967_vm14, %v919_v42, -1e+30  ;;  %vm972_vm11 = vcmp.gt.f32.partialorder %v948_v50, 0.0 }
 0x339   :  { %v1037_v40 = vsel %vm388_vm2, %v3384_v35, -inf }
 0x33a   :  { %v1024_v43 = vpop.xlane.xlu0 %1023  ;;  %1038 = vmax.xlane.f32.xlu0 %v1037_v40  ;;  %v637_v44 = vpop.xlane.xlu1 %636 }
 0x33b   :  { %v1082_v45 = vsub.f32 %v3291_v56, %v1024_v43  ;;  %v848_v46 = vadd.f32 %v800_v62, %v637_v44  ;;  %v547_v56 = vpop.f32.mrf.mxu1  ;;  %v809_v62 = vpop.f32.mrf.mxu2 }
 0x33c   :  { %v597_v61 = vmul.f32 %v573_v31, %v547_v56 }
 0x33d   :  { %v3392_v48 = vpop.eup %2629  ;;  %v1112_v49 = vmul.f32 1.442695, %v1082_v45  ;;  %v896_v52 = vmul.f32 0.2, %v848_v46  ;;  %vm872_vm3 = vcmp.gt.f32.partialorder %v848_v46, 0.0 }
 0x33e   :  { %v1163_v54 = vsel %vm388_vm2, %v3392_v48, 0.0  ;;  %v668_v5 = vsel %vm598_vm4, %v597_v61, 0.0 }
 0x33f   :  { %2631 = vpow2.f32 %v1112_v49  ;;  %1164 = vadd.xlane.f32.xlu2 %v1163_v54  ;;  %v920_v55 = vsel %vm872_vm3, %v848_v46, %v896_v52  ;;  %669 = vadd.xlane.f32.xlu1 %v668_v5 }
 0x340   :  { %v3397_v36 = vsel %vm968_vm0, %v920_v55, -1e+30 }
 0x341   :  { %v1040_v59 = vsel %vm388_vm2, %v3397_v36, -inf }
 0x342   :  { %1041 = vmax.xlane.f32.xlu0 %v1040_v59  ;;  %v640_v63 = vpop.xlane.xlu1 %639 }
 0x343   :  { %v849_v14 = vadd.f32 %v803_v33, %v640_v63  ;;  %v812_v21 = vpop.f32.mrf.mxu2 }
 0x345   :  { %v3404_v3 = vpop.eup %2631  ;;  %v897_v4 = vmul.f32 0.2, %v849_v14  ;;  %vm873_vm5 = vcmp.gt.f32.partialorder %v849_v14, 0.0 }
 0x346   :  { %v1166_v6 = vsel %vm388_vm2, %v3404_v3, 0.0 }
 0x347   :  { %1167 = vadd.xlane.f32.xlu2 %v1166_v6  ;;  %v921_v7 = vsel %vm873_vm5, %v849_v14, %v897_v4 }
 0x348   :  { %v3409_v47 = vsel %vm969_vm6, %v921_v7, -1e+30 }
 0x349   :  { %v1043_v8 = vsel %vm388_vm2, %v3409_v47, -inf }
 0x34a   :  { %1044 = vmax.xlane.f32.xlu0 %v1043_v8  ;;  %v643_v10 = vpop.xlane.xlu1 %642 }
 0x34b   :  { %v850_v9 = vadd.f32 %v806_v58, %v643_v10  ;;  %v815_v33 = vpop.f32.mrf.mxu2 }
 0x34d   :  { %v898_v13 = vmul.f32 0.2, %v850_v9  ;;  %vm874_vm4 = vcmp.gt.f32.partialorder %v850_v9, 0.0 }
 0x34f   :  { %v922_v15 = vsel %vm874_vm4, %v850_v9, %v898_v13 }
 0x350   :  { %v3416_v16 = vsel %vm970_vm7, %v922_v15, -1e+30 }
 0x351   :  { %v1046_v27 = vsel %vm388_vm2, %v3416_v16, -inf }
 0x352   :  { %1047 = vmax.xlane.f32.xlu0 %v1046_v27  ;;  %v646_v18 = vpop.xlane.xlu1 %645 }
 0x353   :  { %v851_v20 = vadd.f32 %v809_v62, %v646_v18  ;;  %v818_v45 = vpop.f32.mrf.mxu2 }
 0x355   :  { %v899_v22 = vmul.f32 0.2, %v851_v20  ;;  %vm875_vm8 = vcmp.gt.f32.partialorder %v851_v20, 0.0 }
 0x357   :  { %v923_v24 = vsel %vm875_vm8, %v851_v20, %v899_v22 }
 0x358   :  { %v3423_v25 = vsel %vm971_vm9, %v923_v24, -1e+30 }
 0x359   :  { %v1049_v39 = vsel %vm388_vm2, %v3423_v25, -inf }
 0x35a   :  { %1050 = vmax.xlane.f32.xlu0 %v1049_v39  ;;  %v649_v28 = vpop.xlane.xlu1 %648 }
 0x35b   :  { %v852_v31 = vadd.f32 %v812_v21, %v649_v28 }
 0x35d   :  { %v900_v32 = vmul.f32 0.2, %v852_v31  ;;  %vm876_vm10 = vcmp.gt.f32.partialorder %v852_v31, 0.0 }
 0x35f   :  { %v924_v34 = vsel %vm876_vm10, %v852_v31, %v900_v32 }
 0x360   :  { %v3430_v42 = vsel %vm972_vm11, %v924_v34, -1e+30 }
 0x361   :  { %v1052_v37 = vsel %vm388_vm2, %v3430_v42, -inf }
 0x362   :  { %1053 = vmax.xlane.f32.xlu0 %v1052_v37  ;;  %v652_v40 = vpop.xlane.xlu1 %651 }
 0x363   :  { %v853_v30 = vadd.f32 %v815_v33, %v652_v40 }
 0x365   :  { %v901_v43 = vmul.f32 0.2, %v853_v30  ;;  %vm877_vm12 = vcmp.gt.f32.partialorder %v853_v30, 0.0 }
 0x367   :  { %v925_v44 = vsel %vm877_vm12, %v853_v30, %v901_v43 }
 0x368   :  { %v3437_v46 = vsel %vm973_vm13, %v925_v44, -1e+30 }
 0x369   :  { %v1055_v49 = vsel %vm388_vm2, %v3437_v46, -inf }
 0x36a   :  { %1056 = vmax.xlane.f32.xlu0 %v1055_v49  ;;  %v655_v52 = vpop.xlane.xlu1 %654 }
 0x36b   :  { %v854_v54 = vadd.f32 %v818_v45, %v655_v52 }
 0x36d   :  { %v902_v55 = vmul.f32 0.2, %v854_v54  ;;  %vm878_vm14 = vcmp.gt.f32.partialorder %v854_v54, 0.0 }
 0x36f   :  { %v926_v58 = vsel %vm878_vm14, %v854_v54, %v902_v55 }
 0x370   :  { %v3444_v56 = vsel %vm974_vm15, %v926_v58, -1e+30 }
 0x371   :  { %v1058_v59 = vsel %vm388_vm2, %v3444_v56, -inf }
 0x372   :  { %1059 = vmax.xlane.f32.xlu0 %v1058_v59 }
 0x38a   :  { %v1150_v61 = vpop.xlane.xlu2 %1149 }
 0x38b   :  { %2633 = vrcp.f32 %v1150_v61  ;;  %v1231_v8 = vand.u32 2147483648, %v1150_v61  ;;  %v1229_v12 = vand.u32 2147483647, %v1150_v61  ;;  %vm1225_vm3 = vweird.f32 %v1150_v61 }
 0x38d   :  { %v1027_v63 = vpop.xlane.xlu0 %1026  ;;  %v1232_v18 = vor.u32 1.1754944e-38, %v1231_v8  ;;  %vm1230_vm6 = vcmp.eq.f32.partialorder %v1229_v12, 8.507059e+37 }
 0x38e   :  { %v1083_v0 = vsub.f32 %v3317_v29, %v1027_v63 }
 0x390   :  { %v1114_v14 = vmul.f32 1.442695, %v1083_v0 }
 0x391   :  { %v2634_v4 = vpop.eup %2633 }
 0x392   :  { %v1221_v5 = vmul.f32 %v2634_v4, %v1150_v61  ;;  %2635 = vpow2.f32 %v1114_v14  ;;  %v1153_v6 = vpop.xlane.xlu2 %1152  ;;  %vm1226_vm0 = vweird.f32 %v2634_v4  ;;  %v821_v61 = vpop.f32.mrf.mxu2 }
 0x393   :  { %2637 = vrcp.f32 %v1153_v6  ;;  %vm1227_vm5 = vmor %vm1225_vm3, %vm1226_vm0  ;;  %v1246_v28 = vand.u32 2147483648, %v1153_v6  ;;  %v1244_v33 = vand.u32 2147483647, %v1153_v6  ;;  %vm1240_vm7 = vweird.f32 %v1153_v6 }
 0x394   :  { %v1222_v7 = vsub.f32 1.0, %v1221_v5 }
 0x395   :  { %v1030_v10 = vpop.xlane.xlu0 %1029  ;;  %vm1245_vm9 = vcmp.eq.f32.partialorder %v1244_v33, 8.507059e+37 }
 0x396   :  { %v1223_v62 = vmul.f32 %v2634_v4, %v1222_v7  ;;  %v1084_v9 = vsub.f32 %v3333_v1, %v1030_v10 }
 0x398   :  { %v3450_v13 = vpop.eup %2635  ;;  %v1224_v15 = vadd.f32 %v2634_v4, %v1223_v62  ;;  %v1116_v27 = vmul.f32 1.442695, %v1084_v9 }
 0x399   :  { %v2638_v29 = vpop.eup %2637  ;;  %v1169_v19 = vsel %vm388_vm2, %v3450_v13, 0.0 }
 0x39a   :  { %v1228_v20 = vsel %vm1227_vm5, %v2634_v4, %v1224_v15  ;;  %v1236_v21 = vmul.f32 %v2638_v29, %v1153_v6  ;;  %2639 = vpow2.f32 %v1116_v27  ;;  %1170 = vadd.xlane.f32.xlu2 %v1169_v19  ;;  %v1156_v22 = vpop.xlane.xlu2 %1155  ;;  %vm1241_vm4 = vweird.f32 %v2638_v29 }
 0x39b   :  { %v1233_v24 = vsel %vm1230_vm6, %v1232_v18, %v1228_v20  ;;  %2641 = vrcp.f32 %v1156_v22  ;;  %vm1242_vm8 = vmor %vm1240_vm7, %vm1241_vm4  ;;  %v1261_v53 = vand.u32 2147483648, %v1156_v22  ;;  %v1259_v59 = vand.u32 2147483647, %v1156_v22 }
 0x39c   :  { %v1237_v1 = vsub.f32 1.0, %v1236_v21  ;;  %v1234_v39 = vmul.f32 %v3309_v23, %v1233_v24  ;;  %v1247_v23 = vor.u32 1.1754944e-38, %v1246_v28  ;;  %vm1255_vm11 = vweird.f32 %v1156_v22 }
 0x39d   :  { %v1033_v50 = vpop.xlane.xlu0 %1032  ;;  %v1262_v5 = vor.u32 1.1754944e-38, %v1261_v53  ;;  %vm1260_vm13 = vcmp.eq.f32.partialorder %v1259_v59, 8.507059e+37 }
 0x39e   :  { %v1238_v31 = vmul.f32 %v2638_v29, %v1237_v1  ;;  %v1085_v32 = vsub.f32 %v3350_v2, %v1033_v50  ;;  %2524 = vmatmul.msk.f32.vlgmr.msrb.gmra.mxu3 %vm388_vm2, %v1234_v39  ;;  %2548 = vmatmul.msk.f32.vlgmr.msrb.gmra.mxu0 %vm388_vm2, %v1234_v39  ;;  %v824_v1 = vpop.f32.mrf.mxu2 }
 0x39f   :  { %2572 = vmatmul.msk.f32.vlgmr.msrb.gmra.mxu1 %vm388_vm2, %v1234_v39 }
 0x3a0   :  { %v3459_v34 = vpop.eup %2639  ;;  %v1118_v37 = vmul.f32 1.442695, %v1085_v32  ;;  %v1239_v40 = vadd.f32 %v2638_v29, %v1238_v31 }
 0x3a1   :  { %v2642_v41 = vpop.eup %2641  ;;  %v1172_v30 = vsel %vm388_vm2, %v3459_v34, 0.0 }
 0x3a2   :  { %v1251_v2 = vmul.f32 %v2642_v41, %v1156_v22  ;;  %2643 = vpow2.f32 %v1118_v37  ;;  %1173 = vadd.xlane.f32.xlu2 %v1172_v30  ;;  %v1159_v43 = vpop.xlane.xlu2 %1158  ;;  %v1243_v44 = vsel %vm1242_vm8, %v2638_v29, %v1239_v40  ;;  %vm1256_vm10 = vweird.f32 %v2642_v41  ;;  %v951_v30 = vld [vmem:[%s4268_s1 + $0x98] sm:$0xff] }
 0x3a3   :  { %2645 = vrcp.f32 %v1159_v43  ;;  %v1248_v45 = vsel %vm1245_vm9, %v1247_v23, %v1243_v44  ;;  %vm1257_vm12 = vmor %vm1255_vm11, %vm1256_vm10  ;;  %v1276_v9 = vand.u32 2147483648, %v1159_v43  ;;  %v1274_v18 = vand.u32 2147483647, %v1159_v43 }
 0x3a4   :  { %v1252_v49 = vsub.f32 1.0, %v1251_v2  ;;  %v1249_v52 = vmul.f32 %v3325_v38, %v1248_v45  ;;  %v658_v38 = vpop.xlane.xlu1 %657  ;;  %vm1270_vm15 = vweird.f32 %v1159_v43  ;;  %vm975_vm7 = vcmp.gt.f32.partialorder %v951_v30, 0.0 }
 0x3a5   :  { %v1036_v54 = vpop.xlane.xlu0 %1035  ;;  %vm1275_vm3 = vcmp.eq.f32.partialorder %v1274_v18, 8.507059e+37 }
 0x3a6   :  { %v1253_v55 = vmul.f32 %v2642_v41, %v1252_v49  ;;  %v1086_v58 = vsub.f32 %v3367_v17, %v1036_v54  ;;  %2525 = vmatmul.msk.f32.gmra.mxu3 %vm388_vm2, %v1249_v52  ;;  %2549 = vmatmul.msk.f32.gmra.mxu0 %vm388_vm2, %v1249_v52 }
 0x3a7   :  { %2573 = vmatmul.msk.f32.gmra.mxu1 %vm388_vm2, %v1249_v52 }
 0x3a8   :  { %v3468_v63 = vpop.eup %2643  ;;  %v1120_v0 = vmul.f32 1.442695, %v1086_v58  ;;  %v1254_v14 = vadd.f32 %v2642_v41, %v1253_v55 }
 0x3a9   :  { %v2646_v4 = vpop.eup %2645  ;;  %v1175_v17 = vsel %vm388_vm2, %v3468_v63, 0.0 }
 0x3aa   :  { %v1266_v6 = vmul.f32 %v2646_v4, %v1159_v43  ;;  %2647 = vpow2.f32 %v1120_v0  ;;  %1176 = vadd.xlane.f32.xlu2 %v1175_v17  ;;  %v3472_v7 = vpop.xlane.xlu2 %1161  ;;  %v1258_v8 = vsel %vm1257_vm12, %v2642_v41, %v1254_v14  ;;  %vm1271_vm14 = vweird.f32 %v2646_v4 }
 0x3ab   :  { %2649 = vrcp.f32 %v3472_v7  ;;  %v1263_v10 = vsel %vm1260_vm13, %v1262_v5, %v1258_v8  ;;  %vm1272_vm0 = vmor %vm1270_vm15, %vm1271_vm14  ;;  %v1291_v40 = vand.u32 2147483648, %v3472_v7  ;;  %v1289_v44 = vand.u32 2147483647, %v3472_v7 }
 0x3ac   :  { %v1267_v62 = vsub.f32 1.0, %v1266_v6  ;;  %v1264_v12 = vmul.f32 %v3341_v57, %v1263_v10  ;;  %v1277_v57 = vor.u32 1.1754944e-38, %v1276_v9  ;;  %v661_v31 = vpop.xlane.xlu1 %660  ;;  %vm1285_vm4 = vweird.f32 %v3472_v7 }
 0x3ad   :  { %v1039_v15 = vpop.xlane.xlu0 %1038  ;;  %v1292_v53 = vor.u32 1.1754944e-38, %v1291_v40  ;;  %v856_v54 = vadd.f32 %v824_v1, %v661_v31  ;;  %vm1290_vm9 = vcmp.eq.f32.partialorder %v1289_v44, 8.507059e+37 }
 0x3ae   :  { %v1268_v27 = vmul.f32 %v2646_v4, %v1267_v62  ;;  %v1087_v29 = vsub.f32 %v3384_v35, %v1039_v15  ;;  %2526 = vmatmul.msk.f32.gmra.mxu3 %vm388_vm2, %v1264_v12  ;;  %2550 = vmatmul.msk.f32.gmra.mxu0 %vm388_vm2, %v1264_v12  ;;  %v855_v35 = vadd.f32 %v821_v61, %v658_v38 }
 0x3af   :  { %2574 = vmatmul.msk.f32.gmra.mxu1 %vm388_vm2, %v1264_v12  ;;  %vm880_vm10 = vcmp.gt.f32.partialorder %v856_v54, 0.0  ;;  %v952_v12 = vld [vmem:[%s4268_s1 + $0xa0] sm:$0xff] }
 0x3b0   :  { %v3480_v19 = vpop.eup %2647  ;;  %v1122_v20 = vmul.f32 1.442695, %v1087_v29  ;;  %v1269_v21 = vadd.f32 %v2646_v4, %v1268_v27  ;;  %v903_v23 = vmul.f32 0.2, %v855_v35  ;;  %vm879_vm5 = vcmp.gt.f32.partialorder %v855_v35, 0.0 }
 0x3b1   :  { %v2650_v22 = vpop.eup %2649  ;;  %v1178_v24 = vsel %vm388_vm2, %v3480_v19, 0.0  ;;  %vm976_vm14 = vcmp.gt.f32.partialorder %v952_v12, 0.0 }
 0x3b2   :  { %v1281_v39 = vmul.f32 %v2650_v22, %v3472_v7  ;;  %2651 = vpow2.f32 %v1122_v20  ;;  %1179 = vadd.xlane.f32.xlu2 %v1178_v24  ;;  %v3485_v28 = vpop.xlane.xlu2 %1164  ;;  %v1273_v50 = vsel %vm1272_vm0, %v2646_v4, %v1269_v21  ;;  %vm1286_vm6 = vweird.f32 %v2650_v22  ;;  %v827_v4 = vpop.f32.mrf.mxu2 }
 0x3b3   :  { %2653 = vrcp.f32 %v3485_v28  ;;  %v1278_v32 = vsel %vm1275_vm3, %v1277_v57, %v1273_v50  ;;  %vm1287_vm8 = vmor %vm1285_vm4, %vm1286_vm6  ;;  %v927_v55 = vsel %vm879_vm5, %v855_v35, %v903_v23  ;;  %v1306_v17 = vand.u32 2147483648, %v3485_v28 }
 0x3b4   :  { %v1282_v33 = vsub.f32 1.0, %v1281_v39  ;;  %v1279_v37 = vmul.f32 %v3358_v11, %v1278_v32  ;;  %v664_v5 = vpop.xlane.xlu1 %663  ;;  %v904_v7 = vmul.f32 0.2, %v856_v54  ;;  %v3511_v8 = vsel %vm975_vm7, %v927_v55, -1e+30 }
 0x3b5   :  { %v1042_v41 = vpop.xlane.xlu0 %1041  ;;  %vm1300_vm12 = vweird.f32 %v3485_v28  ;;  %v1307_v18 = vor.u32 1.1754944e-38, %v1306_v17  ;;  %v857_v35 = vadd.f32 %v827_v4, %v664_v5  ;;  %v2078_v17 = vld [vmem:[%s4278_s11 + $0x78] sm:$0xff] }
 0x3b6   :  { %v1283_v2 = vmul.f32 %v2650_v22, %v1282_v33  ;;  %v1088_v43 = vsub.f32 %v3397_v36, %v1042_v41  ;;  %2527 = vmatmul.msk.f32.gmra.mxu3 %vm388_vm2, %v1279_v37  ;;  %2551 = vmatmul.msk.f32.gmra.mxu0 %vm388_vm2, %v1279_v37  ;;  %v928_v21 = vsel %vm880_vm10, %v856_v54, %v904_v7 }
 0x3b7   :  { %2575 = vmatmul.msk.f32.gmra.mxu1 %vm388_vm2, %v1279_v37  ;;  %v3532_v31 = vsel %vm976_vm14, %v928_v21, -1e+30  ;;  %vm881_vm5 = vcmp.gt.f32.partialorder %v857_v35, 0.0  ;;  %2111 = vmatpush.msrb.mxu2 %v2078_v17 }
 0x3b8   :  { %v3498_v11 = vpop.eup %2651  ;;  %v1124_v45 = vmul.f32 1.442695, %v1088_v43  ;;  %v1284_v49 = vadd.f32 %v2650_v22, %v1283_v2 }
 0x3b9   :  { %v2654_v52 = vpop.eup %2653  ;;  %v1181_v36 = vsel %vm388_vm2, %v3498_v11, 0.0 }
 0x3ba   :  { %v1296_v58 = vmul.f32 %v2654_v52, %v3485_v28  ;;  %2655 = vpow2.f32 %v1124_v45  ;;  %1182 = vadd.xlane.f32.xlu2 %v1181_v36  ;;  %v3505_v59 = vpop.xlane.xlu2 %1167  ;;  %v1288_v61 = vsel %vm1287_vm8, %v2650_v22, %v1284_v49  ;;  %vm1301_vm11 = vweird.f32 %v2654_v52  ;;  %v830_v40 = vpop.f32.mrf.mxu2 }
 0x3bb   :  { %2657 = vrcp.f32 %v3505_v59  ;;  %v1293_v0 = vsel %vm1290_vm9, %v1292_v53, %v1288_v61  ;;  %vm1302_vm13 = vmor %vm1300_vm12, %vm1301_vm11  ;;  %v1319_v37 = vand.u32 2147483647, %v3505_v59  ;;  %vm1315_vm3 = vweird.f32 %v3505_v59 }
 0x3bc   :  { %v1297_v14 = vsub.f32 1.0, %v1296_v58  ;;  %v1294_v38 = vmul.f32 %v3375_v26, %v1293_v0  ;;  %v1304_v26 = vand.u32 2147483647, %v3485_v28  ;;  %v1321_v28 = vand.u32 2147483648, %v3505_v59  ;;  %v667_v41 = vpop.xlane.xlu1 %666 }
 0x3bd   :  { %v1045_v6 = vpop.xlane.xlu0 %1044  ;;  %v1064_v45 = vsel %vm388_vm2, %v3532_v31, -inf  ;;  %vm1320_vm4 = vcmp.eq.f32.partialorder %v1319_v37, 8.507059e+37  ;;  %v858_v53 = vadd.f32 %v830_v40, %v667_v41 }
 0x3be   :  { %v1298_v10 = vmul.f32 %v2654_v52, %v1297_v14  ;;  %v1089_v62 = vsub.f32 %v3409_v47, %v1045_v6  ;;  %2528 = vmatmul.msk.f32.gmra.mxu3 %vm388_vm2, %v1294_v38  ;;  %2552 = vmatmul.msk.f32.gmra.mxu0 %vm388_vm2, %v1294_v38  ;;  %v1061_v47 = vsel %vm388_vm2, %v3511_v8, -inf  ;;  %vm1305_vm15 = vcmp.eq.f32.partialorder %v1304_v26, 8.507059e+37  ;;  %v2077_v6 = vld [vmem:[%s4278_s11 + $0x70] sm:$0xff] }
 0x3bf   :  { %2576 = vmatmul.msk.f32.gmra.mxu1 %vm388_vm2, %v1294_v38  ;;  %v1322_v43 = vor.u32 1.1754944e-38, %v1321_v28  ;;  %v906_v61 = vmul.f32 0.2, %v858_v53  ;;  %vm882_vm8 = vcmp.gt.f32.partialorder %v858_v53, 0.0  ;;  %2112 = vmatpush.msrb.mxu2 %v2077_v6 }
 0x3c0   :  { %v3521_v9 = vpop.eup %2655  ;;  %v1126_v15 = vmul.f32 1.442695, %v1089_v62  ;;  %v1299_v27 = vadd.f32 %v2654_v52, %v1298_v10  ;;  %v2076_v62 = vld [vmem:[%s4278_s11 + $0x68] sm:$0xff] }
 0x3c1   :  { %v2658_v29 = vpop.eup %2657  ;;  %v1184_v20 = vsel %vm388_vm2, %v3521_v9, 0.0  ;;  %v930_v10 = vsel %vm882_vm8, %v858_v53, %v906_v61  ;;  %2113 = vmatpush.msrb.mxu2 %v2076_v62  ;;  %v2065_v53 = vld [vmem:[%s4278_s11 + $0x10] sm:$0xff] }
 0x3c2   :  { %v1311_v22 = vmul.f32 %v2658_v29, %v3505_v59  ;;  %2659 = vpow2.f32 %v1126_v15  ;;  %1062 = vmax.xlane.f32.xlu2 %v1061_v47  ;;  %1185 = vadd.xlane.f32.xlu1 %v1184_v20  ;;  %v1303_v57 = vsel %vm1302_vm13, %v2654_v52, %v1299_v27  ;;  %vm1316_vm0 = vweird.f32 %v2658_v29  ;;  %v833_v38 = vpop.f32.mrf.mxu2  ;;  %v2075_v47 = vld [vmem:[%s4278_s11 + $0x60] sm:$0xff]  ;;  %v955_v20 = vld [vmem:[%s4268_s1 + $0xb8] sm:$0xff] }
 0x3c3   :  { %v1308_v24 = vsel %vm1305_vm15, %v1307_v18, %v1303_v57  ;;  %vm1317_vm6 = vmor %vm1315_vm3, %vm1316_vm0  ;;  %2114 = vmatpush.msrb.mxu2 %v2075_v47  ;;  %vm979_vm11 = vcmp.gt.f32.partialorder %v955_v20, 0.0  ;;  %v1919_v47 = vld [vmem:[%s4277_s10] sm:$0xff] }
 0x3c4   :  { %v1312_v1 = vsub.f32 1.0, %v1311_v22  ;;  %v1309_v39 = vmul.f32 %v3392_v48, %v1308_v24  ;;  %v905_v48 = vmul.f32 0.2, %v857_v35  ;;  %v670_v4 = vpop.xlane.xlu1 %669 }
 0x3c5   :  { %v1048_v50 = vpop.xlane.xlu0 %1047  ;;  %v859_v7 = vadd.f32 %v833_v38, %v670_v4 }
 0x3c6   :  { %v1313_v32 = vmul.f32 %v2658_v29, %v1312_v1  ;;  %v1090_v33 = vsub.f32 %v3416_v16, %v1048_v50  ;;  %2529 = vmatmul.msk.f32.gmra.mxu3 %vm388_vm2, %v1309_v39  ;;  %2553 = vmatmul.msk.f32.gmra.mxu0 %vm388_vm2, %v1309_v39  ;;  %v953_v16 = vld [vmem:[%s4268_s1 + $0xa8] sm:$0xff]  ;;  %v929_v36 = vsel %vm881_vm5, %v857_v35, %v905_v48  ;;  %v2073_v48 = vld [vmem:[%s4278_s11 + $0x50] sm:$0xff] }
 0x3c7   :  { %2577 = vmatmul.msk.f32.gmra.mxu1 %vm388_vm2, %v1309_v39  ;;  %vm977_vm7 = vcmp.gt.f32.partialorder %v953_v16, 0.0  ;;  %v907_v27 = vmul.f32 0.2, %v859_v7  ;;  %vm883_vm10 = vcmp.gt.f32.partialorder %v859_v7, 0.0  ;;  %v2071_v16 = vld [vmem:[%s4278_s11 + $0x40] sm:$0xff] }
 0x3c8   :  { %v3539_v23 = vpop.eup %2659  ;;  %v1128_v30 = vmul.f32 1.442695, %v1090_v33  ;;  %v1314_v2 = vadd.f32 %v2658_v29, %v1313_v32  ;;  %v3554_v59 = vsel %vm977_vm7, %v929_v36, -1e+30  ;;  %v2064_v36 = vld [vmem:[%s4278_s11 + $0x8] sm:$0xff] }
 0x3c9   :  { %v1187_v44 = vsel %vm388_vm2, %v3539_v23, 0.0  ;;  %v1067_v5 = vsel %vm388_vm2, %v3554_v59, -inf  ;;  %v931_v57 = vsel %vm883_vm10, %v859_v7, %v907_v27 }
 0x3ca   :  { %2661 = vpow2.f32 %v1128_v30  ;;  %1188 = vadd.xlane.f32.xlu0 %v1187_v44  ;;  %1065 = vmax.xlane.f32.xlu1 %v1064_v45  ;;  %v1318_v49 = vsel %vm1317_vm6, %v2658_v29, %v1314_v2  ;;  %v3594_v1 = vsel %vm979_vm11, %v931_v57, -1e+30  ;;  %v2069_v44 = vld [vmem:[%s4278_s11 + $0x30] sm:$0xff]  ;;  %v2068_v45 = vld [vmem:[%s4278_s11 + $0x28] sm:$0xff] }
 0x3cb   :  { %v1323_v52 = vsel %vm1320_vm4, %v1322_v43, %v1318_v49  ;;  %v1073_v32 = vsel %vm388_vm2, %v3594_v1, -inf  ;;  %v2070_v43 = vld [vmem:[%s4278_s11 + $0x38] sm:$0xff]  ;;  %v2067_v49 = vld [vmem:[%s4278_s11 + $0x20] sm:$0xff] }
 0x3cc   :  { %v1324_v54 = vmul.f32 %v3404_v3, %v1323_v52  ;;  %v954_v3 = vld [vmem:[%s4268_s1 + $0xb0] sm:$0xff]  ;;  %v2066_v52 = vld [vmem:[%s4278_s11 + $0x18] sm:$0xff] }
 0x3cd   :  { %v1051_v55 = vpop.xlane.xlu0 %1050  ;;  %vm978_vm9 = vcmp.gt.f32.partialorder %v954_v3, 0.0 }
 0x3ce   :  { %v1091_v58 = vsub.f32 %v3423_v25, %v1051_v55  ;;  %2530 = vmatmul.msk.f32.gmra.mxu3 %vm388_vm2, %v1324_v54  ;;  %2554 = vmatmul.msk.f32.gmra.mxu0 %vm388_vm2, %v1324_v54  ;;  %v3576_v15 = vsel %vm978_vm9, %v930_v10, -1e+30 }
 0x3cf   :  { %2578 = vmatmul.msk.f32.gmra.mxu1 %vm388_vm2, %v1324_v54  ;;  %v1070_v21 = vsel %vm388_vm2, %v3576_v15, -inf  ;;  %v2063_v54 = vld [vmem:[%s4278_s11] sm:$0xff] }
 0x3d0   :  { %v3557_v0 = vpop.eup %2661  ;;  %v1130_v14 = vmul.f32 1.442695, %v1091_v58 }
 0x3d1   :  { %v1190_v25 = vsel %vm388_vm2, %v3557_v0, 0.0 }
 0x3d2   :  { %2663 = vpow2.f32 %v1130_v14  ;;  %1191 = vadd.xlane.f32.xlu2 %v1190_v25  ;;  %1068 = vmax.xlane.f32.xlu0 %v1067_v5 }
 0x3d5   :  { %v1054_v26 = vpop.xlane.xlu0 %1053 }
 0x3d6   :  { %v1092_v12 = vsub.f32 %v3430_v42, %v1054_v26  ;;  %v2074_v42 = vld [vmem:[%s4278_s11 + $0x58] sm:$0xff] }
 0x3d7   :  { %2115 = vmatpush.msrb.mxu2 %v2074_v42 }
 0x3d8   :  { %v3581_v29 = vpop.eup %2663  ;;  %v1132_v18 = vmul.f32 1.442695, %v1092_v12 }
 0x3d9   :  { %v1193_v22 = vsel %vm388_vm2, %v3581_v29, 0.0  ;;  %2116 = vmatpush.msrb.mxu2 %v2073_v48 }
 0x3da   :  { %2665 = vpow2.f32 %v1132_v18  ;;  %1071 = vmax.xlane.f32.xlu2 %v1070_v21  ;;  %1194 = vadd.xlane.f32.xlu1 %v1193_v22 }
 0x3dd   :  { %v1057_v24 = vpop.xlane.xlu0 %1056 }
 0x3de   :  { %v1093_v35 = vsub.f32 %v3437_v46, %v1057_v24 }
 0x3e0   :  { %v3596_v39 = vpop.eup %2665  ;;  %v1134_v28 = vmul.f32 1.442695, %v1093_v35 }
 0x3e1   :  { %v1196_v50 = vsel %vm388_vm2, %v3596_v39, 0.0 }
 0x3e2   :  { %2667 = vpow2.f32 %v1134_v28  ;;  %1197 = vadd.xlane.f32.xlu0 %v1196_v50  ;;  %1074 = vmax.xlane.f32.xlu1 %v1073_v32 }
 0x3e5   :  { %v1060_v33 = vpop.xlane.xlu0 %1059 }
 0x3e6   :  { %v1094_v37 = vsub.f32 %v3444_v56, %v1060_v33  ;;  %v2072_v56 = vld [vmem:[%s4278_s11 + $0x48] sm:$0xff] }
 0x3e7   :  { %2117 = vmatpush.msrb.mxu2 %v2072_v56 }
 0x3e8   :  { %v3603_v40 = vpop.eup %2667  ;;  %v1136_v46 = vmul.f32 1.442695, %v1094_v37  ;;  %v1922_v37 = vld [vmem:[%s4277_s10 + $0x18] sm:$0xff] }
 0x3e9   :  { %v1199_v41 = vsel %vm388_vm2, %v3603_v40, 0.0  ;;  %2118 = vmatpush.msrb.mxu2 %v2071_v16 }
 0x3ea   :  { %2669 = vpow2.f32 %v1136_v46  ;;  %1200 = vadd.xlane.f32.xlu2 %v1199_v41 }
 0x3eb   :  { %2119 = vmatpush.msrb.mxu2 %v2070_v43 }
 0x3ed   :  { %2120 = vmatpush.msrb.mxu2 %v2069_v44 }
 0x3ef   :  { %2121 = vmatpush.msrb.mxu2 %v2068_v45 }
 0x3f0   :  { %v3610_v30 = vpop.eup %2669 }
 0x3f1   :  { %v1202_v2 = vsel %vm388_vm2, %v3610_v30, 0.0  ;;  %2122 = vmatpush.msrb.mxu2 %v2067_v49 }
 0x3f2   :  { %1203 = vadd.xlane.f32.xlu0 %v1202_v2 }
 0x3f3   :  { %2123 = vmatpush.msrb.mxu2 %v2066_v52 }
 0x3f5   :  { %2124 = vmatpush.msrb.mxu2 %v2065_v53 }
 0x3f7   :  { %2125 = vmatpush.msrb.mxu2 %v2064_v36 }
 0x3f9   :  { %2126 = vmatpush.msrb.mxu2 %v2063_v54  ;;  %v1925_v54 = vld [vmem:[%s4277_s10 + $0x30] sm:$0xff] }
 0x40d   :  { %v1171_v55 = vpop.xlane.xlu2 %1170 }
 0x40e   :  { %2671 = vrcp.f32 %v1171_v55  ;;  %v1336_v4 = vand.u32 2147483648, %v1171_v55  ;;  %v1334_v25 = vand.u32 2147483647, %v1171_v55  ;;  %vm1330_vm13 = vweird.f32 %v1171_v55 }
 0x410   :  { %v1337_v6 = vor.u32 1.1754944e-38, %v1336_v4  ;;  %vm1335_vm15 = vcmp.eq.f32.partialorder %v1334_v25, 8.507059e+37 }
 0x414   :  { %v2672_v58 = vpop.eup %2671 }
 0x415   :  { %v1326_v61 = vmul.f32 %v2672_v58, %v1171_v55  ;;  %v1174_v14 = vpop.xlane.xlu2 %1173  ;;  %vm1331_vm12 = vweird.f32 %v2672_v58 }
 0x416   :  { %2673 = vrcp.f32 %v1174_v14  ;;  %vm1332_vm14 = vmor %vm1330_vm13, %vm1331_vm12  ;;  %v1351_v18 = vand.u32 2147483648, %v1174_v14  ;;  %v1349_v21 = vand.u32 2147483647, %v1174_v14  ;;  %vm1345_vm3 = vweird.f32 %v1174_v14 }
 0x417   :  { %v1327_v38 = vsub.f32 1.0, %v1326_v61 }
 0x418   :  { %v1352_v35 = vor.u32 1.1754944e-38, %v1351_v18  ;;  %vm1350_vm6 = vcmp.eq.f32.partialorder %v1349_v21, 8.507059e+37 }
 0x419   :  { %v1328_v3 = vmul.f32 %v2672_v58, %v1327_v38 }
 0x41b   :  { %v1329_v5 = vadd.f32 %v2672_v58, %v1328_v3 }
 0x41c   :  { %v2674_v17 = vpop.eup %2673 }
 0x41d   :  { %v1341_v7 = vmul.f32 %v2674_v17, %v1174_v14  ;;  %v1177_v10 = vpop.xlane.xlu2 %1176  ;;  %v1333_v62 = vsel %vm1332_vm14, %v2672_v58, %v1329_v5  ;;  %vm1346_vm0 = vweird.f32 %v2674_v17 }
 0x41e   :  { %2675 = vrcp.f32 %v1177_v10  ;;  %v1338_v26 = vsel %vm1335_vm15, %v1337_v6, %v1333_v62  ;;  %vm1347_vm5 = vmor %vm1345_vm3, %vm1346_vm0  ;;  %v1366_v41 = vand.u32 2147483648, %v1177_v10  ;;  %v1364_v56 = vand.u32 2147483647, %v1177_v10 }
 0x41f   :  { %v1342_v12 = vsub.f32 1.0, %v1341_v7  ;;  %v1339_v27 = vmul.f32 %v3450_v13, %v1338_v26  ;;  %vm1360_vm7 = vweird.f32 %v1177_v10  ;;  %v1928_v26 = vld [vmem:[%s4277_s10 + $0x48] sm:$0xff] }
 0x420   :  { %v1367_v45 = vor.u32 1.1754944e-38, %v1366_v41  ;;  %vm1365_vm9 = vcmp.eq.f32.partialorder %v1364_v56, 8.507059e+37 }
 0x421   :  { %v1343_v20 = vmul.f32 %v2674_v17, %v1342_v12  ;;  %v1669_v42 = vpop.f32.mrf.mxu3  ;;  %2531 = vmatmul.msk.f32.gmra.mxu3 %vm388_vm2, %v1339_v27  ;;  %2555 = vmatmul.msk.f32.gmra.mxu0 %vm388_vm2, %v1339_v27 }
 0x422   :  { %v1991_v22 = vmul.f32 %v1919_v47, %v1669_v42  ;;  %2579 = vmatmul.msk.f32.gmra.mxu1 %vm388_vm2, %v1339_v27 }
 0x423   :  { %v1344_v57 = vadd.f32 %v2674_v17, %v1343_v20 }
 0x424   :  { %v2676_v24 = vpop.eup %2675  ;;  %2127 = vmatmul.f32.vlgmr.msrb.gmra.mxu2 %v1991_v22 }
 0x425   :  { %v1356_v28 = vmul.f32 %v2676_v24, %v1177_v10  ;;  %v1180_v13 = vpop.xlane.xlu2 %1179  ;;  %v1348_v50 = vsel %vm1347_vm5, %v2674_v17, %v1344_v57  ;;  %vm1361_vm4 = vweird.f32 %v2676_v24 }
 0x426   :  { %2677 = vrcp.f32 %v1180_v13  ;;  %v1353_v32 = vsel %vm1350_vm6, %v1352_v35, %v1348_v50  ;;  %vm1362_vm8 = vmor %vm1360_vm7, %vm1361_vm4  ;;  %v1381_v61 = vand.u32 2147483648, %v1180_v13  ;;  %v1379_v4 = vand.u32 2147483647, %v1180_v13 }
 0x427   :  { %v1357_v33 = vsub.f32 1.0, %v1356_v28  ;;  %v1354_v46 = vmul.f32 %v3459_v34, %v1353_v32  ;;  %vm1375_vm11 = vweird.f32 %v1180_v13 }
 0x428   :  { %v1382_v5 = vor.u32 1.1754944e-38, %v1381_v61  ;;  %vm1380_vm13 = vcmp.eq.f32.partialorder %v1379_v4, 8.507059e+37 }
 0x429   :  { %v1358_v48 = vmul.f32 %v2676_v24, %v1357_v33  ;;  %v1672_v2 = vpop.f32.mrf.mxu3  ;;  %2532 = vmatmul.msk.f32.gmra.mxu3 %vm388_vm2, %v1354_v46  ;;  %2556 = vmatmul.msk.f32.gmra.mxu0 %vm388_vm2, %v1354_v46  ;;  %v1931_v33 = vld [vmem:[%s4277_s10 + $0x60] sm:$0xff] }
 0x42a   :  { %v1994_v16 = vmul.f32 %v1922_v37, %v1672_v2  ;;  %2580 = vmatmul.msk.f32.gmra.mxu1 %vm388_vm2, %v1354_v46 }
 0x42b   :  { %v1359_v43 = vadd.f32 %v2676_v24, %v1358_v48 }
 0x42c   :  { %v2678_v44 = vpop.eup %2677  ;;  %2130 = vmatmul.f32.gmra.mxu2 %v1994_v16 }
 0x42d   :  { %v1371_v49 = vmul.f32 %v2678_v44, %v1180_v13  ;;  %v1183_v34 = vpop.xlane.xlu2 %1182  ;;  %v1363_v52 = vsel %vm1362_vm8, %v2676_v24, %v1359_v43  ;;  %vm1376_vm10 = vweird.f32 %v2678_v44 }
 0x42e   :  { %2679 = vrcp.f32 %v1183_v34  ;;  %v1368_v53 = vsel %vm1365_vm9, %v1367_v45, %v1363_v52  ;;  %vm1377_vm12 = vmor %vm1375_vm11, %vm1376_vm10  ;;  %v1396_v20 = vand.u32 2147483648, %v1183_v34  ;;  %vm1390_vm15 = vweird.f32 %v1183_v34 }
 0x42f   :  { %v1372_v36 = vsub.f32 1.0, %v1371_v49  ;;  %v1369_v55 = vmul.f32 %v3468_v63, %v1368_v53 }
 0x430   :  { %v1397_v24 = vor.u32 1.1754944e-38, %v1396_v20 }
 0x431   :  { %v1373_v58 = vmul.f32 %v2678_v44, %v1372_v36  ;;  %v1675_v14 = vpop.f32.mrf.mxu3  ;;  %2533 = vmatmul.msk.f32.gmra.mxu3 %vm388_vm2, %v1369_v55  ;;  %2557 = vmatmul.msk.f32.gmra.mxu0 %vm388_vm2, %v1369_v55 }
 0x432   :  { %v1997_v38 = vmul.f32 %v1925_v54, %v1675_v14  ;;  %2581 = vmatmul.msk.f32.gmra.mxu1 %vm388_vm2, %v1369_v55 }
 0x433   :  { %v1374_v3 = vadd.f32 %v2678_v44, %v1373_v58  ;;  %v1934_v58 = vld [vmem:[%s4277_s10 + $0x78] sm:$0xff] }
 0x434   :  { %v2680_v25 = vpop.eup %2679  ;;  %2133 = vmatmul.f32.gmra.mxu2 %v1997_v38 }
 0x435   :  { %v1386_v17 = vmul.f32 %v2680_v25, %v1183_v34  ;;  %v1063_v63 = vpop.xlane.xlu2 %1062  ;;  %v3665_v6 = vpop.xlane.xlu1 %1185  ;;  %v1378_v7 = vsel %vm1377_vm12, %v2678_v44, %v1374_v3  ;;  %vm1391_vm14 = vweird.f32 %v2680_v25 }
 0x436   :  { %v1095_v10 = vsub.f32 %v3511_v8, %v1063_v63  ;;  %2681 = vrcp.f32 %v3665_v6  ;;  %v1383_v12 = vsel %vm1380_vm13, %v1382_v5, %v1378_v7  ;;  %v1394_v8 = vand.u32 2147483647, %v1183_v34  ;;  %vm1392_vm0 = vmor %vm1390_vm15, %vm1391_vm14 }
 0x437   :  { %v1387_v62 = vsub.f32 1.0, %v1386_v17  ;;  %v1384_v27 = vmul.f32 %v3480_v19, %v1383_v12  ;;  %v1411_v56 = vand.u32 2147483648, %v3665_v6  ;;  %v1409_v44 = vand.u32 2147483647, %v3665_v6 }
 0x438   :  { %v1138_v47 = vmul.f32 1.442695, %v1095_v10  ;;  %vm1395_vm3 = vcmp.eq.f32.partialorder %v1394_v8, 8.507059e+37  ;;  %vm1405_vm6 = vweird.f32 %v3665_v6 }
 0x439   :  { %v1388_v18 = vmul.f32 %v2680_v25, %v1387_v62  ;;  %v1678_v42 = vpop.f32.mrf.mxu3  ;;  %2534 = vmatmul.msk.f32.gmra.mxu3 %vm388_vm2, %v1384_v27  ;;  %2558 = vmatmul.msk.f32.gmra.mxu0 %vm388_vm2, %v1384_v27  ;;  %v1412_v49 = vor.u32 1.1754944e-38, %v1411_v56  ;;  %vm1410_vm7 = vcmp.eq.f32.partialorder %v1409_v44, 8.507059e+37 }
 0x43a   :  { %2683 = vpow2.f32 %v1138_v47  ;;  %v2000_v21 = vmul.f32 %v1928_v26, %v1678_v42  ;;  %2582 = vmatmul.msk.f32.gmra.mxu1 %vm388_vm2, %v1384_v27 }
 0x43b   :  { %v1389_v22 = vadd.f32 %v2680_v25, %v1388_v18  ;;  %v1937_v18 = vld [vmem:[%s4277_s10 + $0x90] sm:$0xff] }
 0x43c   :  { %v2682_v57 = vpop.eup %2681  ;;  %2136 = vmatmul.f32.gmra.mxu2 %v2000_v21 }
 0x43d   :  { %v1401_v19 = vmul.f32 %v2682_v57, %v3665_v6  ;;  %v3677_v35 = vpop.xlane.xlu0 %1188  ;;  %v1066_v28 = vpop.xlane.xlu1 %1065  ;;  %v1393_v13 = vsel %vm1392_vm0, %v2680_v25, %v1389_v22  ;;  %vm1406_vm5 = vweird.f32 %v2682_v57 }
 0x43e   :  { %2685 = vrcp.f32 %v3677_v35  ;;  %v1096_v50 = vsub.f32 %v3532_v31, %v1066_v28  ;;  %v1398_v37 = vsel %vm1395_vm3, %v1397_v24, %v1393_v13  ;;  %vm1407_vm4 = vmor %vm1405_vm6, %vm1406_vm5  ;;  %v1426_v25 = vand.u32 2147483648, %v3677_v35 }
 0x43f   :  { %v1402_v32 = vsub.f32 1.0, %v1401_v19  ;;  %v1399_v48 = vmul.f32 %v3498_v11, %v1398_v37  ;;  %v1424_v63 = vand.u32 2147483647, %v3677_v35  ;;  %vm1420_vm9 = vweird.f32 %v3677_v35 }
 0x440   :  { %v3684_v46 = vpop.eup %2683  ;;  %v1140_v41 = vmul.f32 1.442695, %v1096_v50  ;;  %v1427_v7 = vor.u32 1.1754944e-38, %v1426_v25 }
 0x441   :  { %v1403_v2 = vmul.f32 %v2682_v57, %v1402_v32  ;;  %v1681_v16 = vpop.f32.mrf.mxu3  ;;  %v1205_v43 = vsel %vm388_vm2, %v3684_v46, 0.0  ;;  %2535 = vmatmul.msk.f32.gmra.mxu3 %vm388_vm2, %v1399_v48  ;;  %2559 = vmatmul.msk.f32.gmra.mxu0 %vm388_vm2, %v1399_v48  ;;  %vm1425_vm11 = vcmp.eq.f32.partialorder %v1424_v63, 8.507059e+37 }
 0x442   :  { %2687 = vpow2.f32 %v1140_v41  ;;  %v2003_v31 = vmul.f32 %v1931_v33, %v1681_v16  ;;  %2583 = vmatmul.msk.f32.gmra.mxu1 %vm388_vm2, %v1399_v48  ;;  %1206 = vadd.xlane.f32.xlu1 %v1205_v43 }
 0x443   :  { %v1404_v11 = vadd.f32 %v2682_v57, %v1403_v2 }
 0x444   :  { %v2686_v45 = vpop.eup %2685  ;;  %2139 = vmatmul.f32.gmra.mxu2 %v2003_v31 }
 0x445   :  { %v1416_v34 = vmul.f32 %v2686_v45, %v3677_v35  ;;  %v3696_v52 = vpop.xlane.xlu2 %1191  ;;  %v1069_v53 = vpop.xlane.xlu0 %1068  ;;  %v1408_v36 = vsel %vm1407_vm4, %v2682_v57, %v1404_v11  ;;  %vm1421_vm8 = vweird.f32 %v2686_v45 }
 0x446   :  { %2689 = vrcp.f32 %v3696_v52  ;;  %v1097_v54 = vsub.f32 %v3554_v59, %v1069_v53  ;;  %v1413_v61 = vsel %vm1410_vm7, %v1412_v49, %v1408_v36  ;;  %vm1422_vm10 = vmor %vm1420_vm9, %vm1421_vm8  ;;  %v1441_v57 = vand.u32 2147483648, %v3696_v52 }
 0x447   :  { %v1417_v55 = vsub.f32 1.0, %v1416_v34  ;;  %v1414_v4 = vmul.f32 %v3521_v9, %v1413_v61  ;;  %v1439_v35 = vand.u32 2147483647, %v3696_v52  ;;  %vm1435_vm13 = vweird.f32 %v3696_v52 }
 0x448   :  { %v3703_v14 = vpop.eup %2687  ;;  %v1142_v38 = vmul.f32 1.442695, %v1097_v54  ;;  %v1442_v13 = vor.u32 1.1754944e-38, %v1441_v57 }
 0x449   :  { %v1418_v3 = vmul.f32 %v2686_v45, %v1417_v55  ;;  %v1684_v5 = vpop.f32.mrf.mxu3  ;;  %v1208_v17 = vsel %vm388_vm2, %v3703_v14, 0.0  ;;  %2536 = vmatmul.msk.f32.gmra.mxu3 %vm388_vm2, %v1414_v4  ;;  %2560 = vmatmul.msk.f32.gmra.mxu0 %vm388_vm2, %v1414_v4  ;;  %vm1440_vm15 = vcmp.eq.f32.partialorder %v1439_v35, 8.507059e+37 }
 0x44a   :  { %2691 = vpow2.f32 %v1142_v38  ;;  %v2006_v59 = vmul.f32 %v1934_v58, %v1684_v5  ;;  %2584 = vmatmul.msk.f32.gmra.mxu1 %vm388_vm2, %v1414_v4  ;;  %1209 = vadd.xlane.f32.xlu2 %v1208_v17 }
 0x44b   :  { %v1419_v9 = vadd.f32 %v2686_v45, %v1418_v3 }
 0x44c   :  { %v2690_v6 = vpop.eup %2689  ;;  %2142 = vmatmul.f32.gmra.mxu2 %v2006_v59 }
 0x44d   :  { %v1431_v10 = vmul.f32 %v2690_v6, %v3696_v52  ;;  %v1072_v62 = vpop.xlane.xlu2 %1071  ;;  %v1195_v26 = vpop.xlane.xlu1 %1194  ;;  %v1423_v12 = vsel %vm1422_vm10, %v2686_v45, %v1419_v9  ;;  %vm1436_vm12 = vweird.f32 %v2690_v6 }
 0x44e   :  { %v1098_v47 = vsub.f32 %v3576_v15, %v1072_v62  ;;  %2693 = vrcp.f32 %v1195_v26  ;;  %v1428_v20 = vsel %vm1425_vm11, %v1427_v7, %v1423_v12  ;;  %vm1437_vm14 = vmor %vm1435_vm13, %vm1436_vm12  ;;  %v1456_v16 = vand.u32 2147483648, %v1195_v26 }
 0x44f   :  { %v1432_v27 = vsub.f32 1.0, %v1431_v10  ;;  %v1429_v8 = vmul.f32 %v3539_v23, %v1428_v20  ;;  %v1454_v45 = vand.u32 2147483647, %v1195_v26  ;;  %vm1450_vm3 = vweird.f32 %v1195_v26 }
 0x450   :  { %v3719_v42 = vpop.eup %2691  ;;  %v1144_v21 = vmul.f32 1.442695, %v1098_v47  ;;  %v1457_v34 = vor.u32 1.1754944e-38, %v1456_v16  ;;  %v1946_v16 = vld [vmem:[%s4277_s10 + $0xd8] sm:$0xff] }
 0x451   :  { %v1433_v22 = vmul.f32 %v2690_v6, %v1432_v27  ;;  %v1687_v24 = vpop.f32.mrf.mxu3  ;;  %v1211_v15 = vsel %vm388_vm2, %v3719_v42, 0.0  ;;  %2537 = vmatmul.msk.f32.gmra.mxu3 %vm388_vm2, %v1429_v8  ;;  %2561 = vmatmul.msk.f32.gmra.mxu0 %vm388_vm2, %v1429_v8  ;;  %vm1455_vm6 = vcmp.eq.f32.partialorder %v1454_v45, 8.507059e+37 }
 0x452   :  { %2695 = vpow2.f32 %v1144_v21  ;;  %v2009_v19 = vmul.f32 %v1937_v18, %v1687_v24  ;;  %2585 = vmatmul.msk.f32.gmra.mxu1 %vm388_vm2, %v1429_v8  ;;  %1212 = vadd.xlane.f32.xlu0 %v1211_v15 }
 0x453   :  { %v1434_v23 = vadd.f32 %v2690_v6, %v1433_v22 }
 0x454   :  { %v2694_v28 = vpop.eup %2693  ;;  %2145 = vmatmul.f32.gmra.mxu2 %v2009_v19 }
 0x455   :  { %v1446_v50 = vmul.f32 %v2694_v28, %v1195_v26  ;;  %v1198_v32 = vpop.xlane.xlu0 %1197  ;;  %v1075_v33 = vpop.xlane.xlu1 %1074  ;;  %v1438_v37 = vsel %vm1437_vm14, %v2690_v6, %v1434_v23  ;;  %vm1451_vm0 = vweird.f32 %v2694_v28 }
 0x456   :  { %2697 = vrcp.f32 %v1198_v32  ;;  %v1099_v41 = vsub.f32 %v3594_v1, %v1075_v33  ;;  %v1443_v2 = vsel %vm1440_vm15, %v1442_v13, %v1438_v37  ;;  %vm1452_vm5 = vmor %vm1450_vm3, %vm1451_vm0  ;;  %v1471_v38 = vand.u32 2147483648, %v1198_v32 }
 0x457   :  { %v1447_v48 = vsub.f32 1.0, %v1446_v50  ;;  %v1444_v31 = vmul.f32 %v3557_v0, %v1443_v2  ;;  %v1469_v3 = vand.u32 2147483647, %v1198_v32  ;;  %vm1465_vm7 = vweird.f32 %v1198_v32 }
 0x458   :  { %v3731_v56 = vpop.eup %2695  ;;  %v1146_v43 = vmul.f32 1.442695, %v1099_v41 }
 0x459   :  { %v1448_v44 = vmul.f32 %v2694_v28, %v1447_v48  ;;  %v1214_v11 = vsel %vm388_vm2, %v3731_v56, 0.0  ;;  %2538 = vmatmul.msk.f32.gmra.mxu3 %vm388_vm2, %v1444_v31  ;;  %2562 = vmatmul.msk.f32.gmra.mxu0 %vm388_vm2, %v1444_v31  ;;  %vm1470_vm9 = vcmp.eq.f32.partialorder %v1469_v3, 8.507059e+37 }
 0x45a   :  { %2699 = vpow2.f32 %v1146_v43  ;;  %2586 = vmatmul.msk.f32.gmra.mxu1 %vm388_vm2, %v1444_v31  ;;  %1215 = vadd.xlane.f32.xlu1 %v1214_v11  ;;  %v2094_v31 = vld [vmem:[%s4278_s11 + $0xf8] sm:$0xff] }
 0x45b   :  { %v1449_v1 = vadd.f32 %v2694_v28, %v1448_v44  ;;  %v2110_v44 = vld [vmem:[%s4278_s11 + $0x178] sm:$0xff]  ;;  %2200 = vmatpush.msra.mxu3 %v2094_v31 }
 0x45c   :  { %v2698_v49 = vpop.eup %2697  ;;  %2289 = vmatpush.msra.mxu0 %v2110_v44  ;;  %v2099_v44 = vld [vmem:[%s4278_s11 + $0x120] sm:$0xff] }
 0x45d   :  { %v1461_v0 = vmul.f32 %v2698_v49, %v1198_v32  ;;  %v1201_v52 = vpop.xlane.xlu2 %1200  ;;  %v1453_v53 = vsel %vm1452_vm5, %v2694_v28, %v1449_v1  ;;  %vm1466_vm4 = vweird.f32 %v2698_v49  ;;  %v1940_v32 = vld [vmem:[%s4277_s10 + $0xa8] sm:$0xff] }
 0x45e   :  { %2701 = vrcp.f32 %v1201_v52  ;;  %v1458_v36 = vsel %vm1455_vm6, %v1457_v34, %v1453_v53  ;;  %vm1467_vm8 = vmor %vm1465_vm7, %vm1466_vm4  ;;  %v1486_v7 = vand.u32 2147483648, %v1201_v52  ;;  %v1484_v26 = vand.u32 2147483647, %v1201_v52  ;;  %v2109_v34 = vld [vmem:[%s4278_s11 + $0x170] sm:$0xff]  ;;  %v2091_v53 = vld [vmem:[%s4278_s11 + $0xe0] sm:$0xff] }
 0x45f   :  { %v1462_v54 = vsub.f32 1.0, %v1461_v0  ;;  %v1459_v55 = vmul.f32 %v3581_v29, %v1458_v36  ;;  %v1472_v29 = vor.u32 1.1754944e-38, %v1471_v38  ;;  %vm1480_vm11 = vweird.f32 %v1201_v52  ;;  %2290 = vmatpush.msra.mxu0 %v2109_v34  ;;  %v2092_v0 = vld [vmem:[%s4278_s11 + $0xe8] sm:$0xff]  ;;  %v2107_v36 = vld [vmem:[%s4278_s11 + $0x160] sm:$0xff]  ;;  %v2098_v34 = vld [vmem:[%s4278_s11 + $0x118] sm:$0xff] }
 0x460   :  { %v3740_v58 = vpop.eup %2699  ;;  %v1487_v27 = vor.u32 1.1754944e-38, %v1486_v7  ;;  %vm1485_vm13 = vcmp.eq.f32.partialorder %v1484_v26, 8.507059e+37  ;;  %v2103_v26 = vld [vmem:[%s4278_s11 + $0x140] sm:$0xff] }
 0x461   :  { %v1463_v61 = vmul.f32 %v2698_v49, %v1462_v54  ;;  %v1217_v4 = vsel %vm388_vm2, %v3740_v58, 0.0  ;;  %2539 = vmatmul.msk.f32.gmra.mxu3 %vm388_vm2, %v1459_v55  ;;  %2563 = vmatmul.msk.f32.gmra.mxu0 %vm388_vm2, %v1459_v55  ;;  %v1949_v54 = vld [vmem:[%s4277_s10 + $0xf0] sm:$0xff] }
 0x462   :  { %2587 = vmatmul.msk.f32.gmra.mxu1 %vm388_vm2, %v1459_v55  ;;  %1218 = vadd.xlane.f32.xlu2 %v1217_v4  ;;  %v2090_v55 = vld [vmem:[%s4278_s11 + $0xd8] sm:$0xff] }
 0x463   :  { %v1464_v25 = vadd.f32 %v2698_v49, %v1463_v61  ;;  %v2106_v61 = vld [vmem:[%s4278_s11 + $0x158] sm:$0xff] }
 0x464   :  { %v2702_v5 = vpop.eup %2701 }
 0x465   :  { %v1476_v17 = vmul.f32 %v2702_v5, %v1201_v52  ;;  %v1204_v59 = vpop.xlane.xlu0 %1203  ;;  %v1468_v63 = vsel %vm1467_vm8, %v2698_v49, %v1464_v25  ;;  %vm1481_vm10 = vweird.f32 %v2702_v5  ;;  %v2093_v49 = vld [vmem:[%s4278_s11 + $0xf0] sm:$0xff]  ;;  %v2108_v52 = vld [vmem:[%s4278_s11 + $0x168] sm:$0xff] }
 0x466   :  { %2703 = vrcp.f32 %v1204_v59  ;;  %v1473_v6 = vsel %vm1470_vm9, %v1472_v29, %v1468_v63  ;;  %vm1482_vm12 = vmor %vm1480_vm11, %vm1481_vm10  ;;  %v1501_v22 = vand.u32 2147483648, %v1204_v59  ;;  %v1499_v24 = vand.u32 2147483647, %v1204_v59  ;;  %2201 = vmatpush.msra.mxu3 %v2093_v49  ;;  %2291 = vmatpush.msra.mxu0 %v2108_v52  ;;  %v2089_v29 = vld [vmem:[%s4278_s11 + $0xd0] sm:$0xff]  ;;  %v2082_v49 = vld [vmem:[%s4278_s11 + $0x98] sm:$0xff] }
 0x467   :  { %v1477_v9 = vsub.f32 1.0, %v1476_v17  ;;  %v1474_v10 = vmul.f32 %v3596_v39, %v1473_v6  ;;  %vm1495_vm15 = vweird.f32 %v1204_v59  ;;  %v2105_v17 = vld [vmem:[%s4278_s11 + $0x150] sm:$0xff]  ;;  %v2104_v6 = vld [vmem:[%s4278_s11 + $0x148] sm:$0xff] }
 0x468   :  { %v1502_v19 = vor.u32 1.1754944e-38, %v1501_v22  ;;  %vm1500_vm3 = vcmp.eq.f32.partialorder %v1499_v24, 8.507059e+37  ;;  %2202 = vmatpush.msra.mxu3 %v2092_v0  ;;  %2292 = vmatpush.msra.mxu0 %v2107_v36 }
 0x469   :  { %v1478_v62 = vmul.f32 %v2702_v5, %v1477_v9  ;;  %2540 = vmatmul.msk.f32.gmra.mxu3 %vm388_vm2, %v1474_v10  ;;  %2564 = vmatmul.msk.f32.gmra.mxu0 %vm388_vm2, %v1474_v10  ;;  %v2088_v9 = vld [vmem:[%s4278_s11 + $0xc8] sm:$0xff] }
 0x46a   :  { %2588 = vmatmul.msk.f32.gmra.mxu1 %vm388_vm2, %v1474_v10  ;;  %2203 = vmatpush.msra.mxu3 %v2091_v53 }
 0x46b   :  { %v1479_v12 = vadd.f32 %v2702_v5, %v1478_v62  ;;  %2293 = vmatpush.msra.mxu0 %v2106_v61  ;;  %v2087_v62 = vld [vmem:[%s4278_s11 + $0xc0] sm:$0xff] }
 0x46c   :  { %v2704_v47 = vpop.eup %2703  ;;  %2204 = vmatpush.msra.mxu3 %v2090_v55 }
 0x46d   :  { %v1491_v18 = vmul.f32 %v2704_v47, %v1204_v59  ;;  %v1483_v20 = vsel %vm1482_vm12, %v2702_v5, %v1479_v12  ;;  %vm1496_vm14 = vweird.f32 %v2704_v47  ;;  %2294 = vmatpush.msra.mxu0 %v2105_v17  ;;  %v2080_v17 = vld [vmem:[%s4278_s11 + $0x88] sm:$0xff] }
 0x46e   :  { %v1488_v21 = vsel %vm1485_vm13, %v1487_v27, %v1483_v20  ;;  %vm1497_vm0 = vmor %vm1495_vm15, %vm1496_vm14  ;;  %2205 = vmatpush.msra.mxu3 %v2089_v29  ;;  %v3843_v27 = vpop.f32.mrf.mxu1  ;;  %v2086_v20 = vld [vmem:[%s4278_s11 + $0xb8] sm:$0xff] }
 0x46f   :  { %v1492_v8 = vsub.f32 1.0, %v1491_v18  ;;  %v1489_v39 = vmul.f32 %v3603_v40, %v1488_v21  ;;  %v3759_v40 = vpop.f32.mrf.mxu0  ;;  %2295 = vmatpush.msra.mxu0 %v2104_v6  ;;  %v2102_v21 = vld [vmem:[%s4278_s11 + $0x138] sm:$0xff] }
 0x470   :  { %2206 = vmatpush.msra.mxu3 %v2088_v9  ;;  %v2096_v9 = vld [vmem:[%s4278_s11 + $0x108] sm:$0xff] }
 0x471   :  { %v1493_v57 = vmul.f32 %v2704_v47, %v1492_v8  ;;  %2541 = vmatmul.msk.f32.gmra.mxu3 %vm388_vm2, %v1489_v39  ;;  %2565 = vmatmul.msk.f32.gmra.mxu0 %vm388_vm2, %v1489_v39 }
 0x472   :  { %2589 = vmatmul.msk.f32.gmra.mxu1 %vm388_vm2, %v1489_v39  ;;  %2207 = vmatpush.msra.mxu3 %v2087_v62  ;;  %v2079_v62 = vld [vmem:[%s4278_s11 + $0x80] sm:$0xff] }
 0x473   :  { %v1494_v15 = vadd.f32 %v2704_v47, %v1493_v57  ;;  %2296 = vmatpush.msra.mxu0 %v2103_v26 }
 0x474   :  { %2208 = vmatpush.msra.mxu3 %v2086_v20 }
 0x475   :  { %v1498_v35 = vsel %vm1497_vm0, %v2704_v47, %v1494_v15  ;;  %v1952_v47 = vld [vmem:[%s4277_s10 + $0x108] sm:$0xff]  ;;  %2297 = vmatpush.msra.mxu0 %v2102_v21 }
 0x476   :  { %v1503_v23 = vsel %vm1500_vm3, %v1502_v19, %v1498_v35  ;;  %v3904_v36 = vpop.f32.mrf.mxu1 }
 0x477   :  { %v1504_v28 = vmul.f32 %v3610_v30, %v1503_v23  ;;  %v3761_v13 = vpop.f32.mrf.mxu0  ;;  %v1943_v30 = vld [vmem:[%s4277_s10 + $0xc0] sm:$0xff]  ;;  %v2085_v23 = vld [vmem:[%s4278_s11 + $0xb0] sm:$0xff] }
 0x478   :  { %2209 = vmatpush.msra.mxu3 %v2085_v23 }
 0x479   :  { %2542 = vmatmul.msk.f32.gmra.mxu3 %vm388_vm2, %v1504_v28  ;;  %2566 = vmatmul.msk.f32.gmra.mxu0 %vm388_vm2, %v1504_v28 }
 0x47a   :  { %2590 = vmatmul.msk.f32.gmra.mxu1 %vm388_vm2, %v1504_v28  ;;  %v2101_v28 = vld [vmem:[%s4278_s11 + $0x130] sm:$0xff] }
 0x47b   :  { %2298 = vmatpush.msra.mxu0 %v2101_v28 }
 0x47f   :  { %v3763_v50 = vpop.f32.mrf.mxu0 }
 0x487   :  { %v3771_v41 = vpop.f32.mrf.mxu0 }
 0x48f   :  { %v3782_v45 = vpop.f32.mrf.mxu0 }
 0x497   :  { %v3824_v59 = vpop.f32.mrf.mxu0 }
 0x4a4   :  { %v1690_v33 = vpop.f32.mrf.mxu3 }
 0x4a5   :  { %v2012_v37 = vmul.f32 %v1940_v32, %v1690_v33 }
 0x4a7   :  { %2148 = vmatmul.f32.gmra.mxu2 %v2012_v37  ;;  %v2084_v37 = vld [vmem:[%s4278_s11 + $0xa8] sm:$0xff] }
 0x4a8   :  { %2210 = vmatpush.msra.mxu3 %v2084_v37 }
 0x4ac   :  { %v1693_v48 = vpop.f32.mrf.mxu3 }
 0x4ad   :  { %v2015_v2 = vmul.f32 %v1943_v30, %v1693_v48  ;;  %v2100_v30 = vld [vmem:[%s4278_s11 + $0x128] sm:$0xff] }
 0x4ae   :  { %2299 = vmatpush.msra.mxu0 %v2100_v30 }
 0x4af   :  { %2151 = vmatmul.f32.gmra.mxu2 %v2015_v2  ;;  %v2083_v2 = vld [vmem:[%s4278_s11 + $0xa0] sm:$0xff] }
 0x4b0   :  { %2211 = vmatpush.msra.mxu3 %v2083_v2  ;;  %2300 = vmatpush.msra.mxu0 %v2099_v44 }
 0x4b2   :  { %2212 = vmatpush.msra.mxu3 %v2082_v49  ;;  %2301 = vmatpush.msra.mxu0 %v2098_v34 }
 0x4b4   :  { %v1696_v43 = vpop.f32.mrf.mxu3 }
 0x4b5   :  { %v2018_v11 = vmul.f32 %v1946_v16, %v1696_v43  ;;  %v3784_v1 = vpop.xlane.xlu1 %1206  ;;  %v3879_v16 = vpop.f32.mrf.mxu0 }
 0x4b6   :  { %2705 = vrcp.f32 %v3784_v1  ;;  %v1516_v10 = vand.u32 2147483648, %v3784_v1  ;;  %v1514_v12 = vand.u32 2147483647, %v3784_v1  ;;  %vm1510_vm6 = vweird.f32 %v3784_v1 }
 0x4b7   :  { %2154 = vmatmul.f32.gmra.mxu2 %v2018_v11 }
 0x4b8   :  { %v1517_v57 = vor.u32 1.1754944e-38, %v1516_v10  ;;  %vm1515_vm7 = vcmp.eq.f32.partialorder %v1514_v12, 8.507059e+37  ;;  %v2095_v12 = vld [vmem:[%s4278_s11 + $0x100] sm:$0xff] }
 0x4bc   :  { %v2706_v38 = vpop.eup %2705  ;;  %v1699_v4 = vpop.f32.mrf.mxu3 }
 0x4bd   :  { %v1506_v3 = vmul.f32 %v2706_v38, %v3784_v1  ;;  %v2021_v25 = vmul.f32 %v1949_v54, %v1699_v4  ;;  %v3815_v5 = vpop.xlane.xlu2 %1209  ;;  %vm1511_vm5 = vweird.f32 %v2706_v38  ;;  %v3925_v6 = vpop.f32.mrf.mxu0 }
 0x4be   :  { %2707 = vrcp.f32 %v3815_v5  ;;  %vm3853_vm4 = vmor %vm1510_vm6, %vm1511_vm5  ;;  %v1531_v31 = vand.u32 2147483648, %v3815_v5  ;;  %v1529_v11 = vand.u32 2147483647, %v3815_v5  ;;  %vm1525_vm9 = vweird.f32 %v3815_v5 }
 0x4bf   :  { %v1507_v63 = vsub.f32 1.0, %v1506_v3  ;;  %2157 = vmatmul.f32.gmra.mxu2 %v2021_v25  ;;  %v2081_v3 = vld [vmem:[%s4278_s11 + $0x90] sm:$0xff] }
 0x4c0   :  { %v1532_v54 = vor.u32 1.1754944e-38, %v1531_v31  ;;  %v2097_v25 = vld [vmem:[%s4278_s11 + $0x110] sm:$0xff]  ;;  %vm1530_vm11 = vcmp.eq.f32.partialorder %v1529_v11, 8.507059e+37  ;;  %2213 = vmatpush.msra.mxu3 %v2081_v3 }
 0x4c1   :  { %v1508_v7 = vmul.f32 %v2706_v38, %v1507_v63  ;;  %2302 = vmatpush.msra.mxu0 %v2097_v25 }
 0x4c2   :  { %2214 = vmatpush.msra.mxu3 %v2080_v17 }
 0x4c3   :  { %v1509_v18 = vadd.f32 %v2706_v38, %v1508_v7  ;;  %2303 = vmatpush.msra.mxu0 %v2096_v9 }
 0x4c4   :  { %v2708_v8 = vpop.eup %2707  ;;  %v1702_v22 = vpop.f32.mrf.mxu3  ;;  %2215 = vmatpush.msra.mxu3 %v2079_v62 }
 0x4c5   :  { %v1521_v24 = vmul.f32 %v2708_v8, %v3815_v5  ;;  %v2024_v15 = vmul.f32 %v1952_v47, %v1702_v22  ;;  %v3858_v19 = vpop.xlane.xlu0 %1212  ;;  %v1513_v35 = vsel %vm3853_vm4, %v2706_v38, %v1509_v18  ;;  %vm1526_vm8 = vweird.f32 %v2708_v8  ;;  %2304 = vmatpush.msra.mxu0 %v2095_v12  ;;  %v3953_v37 = vpop.f32.mrf.mxu0  ;;  %v1923_v12 = vld [vmem:[%s4277_s10 + $0x20] sm:$0xff] }
 0x4c6   :  { %2709 = vrcp.f32 %v3858_v19  ;;  %v1518_v33 = vsel %vm1515_vm7, %v1517_v57, %v1513_v35  ;;  %vm3900_vm10 = vmor %vm1525_vm9, %vm1526_vm8  ;;  %v1546_v10 = vand.u32 2147483648, %v3858_v19  ;;  %v1544_v26 = vand.u32 2147483647, %v3858_v19 }
 0x4c7   :  { %v1522_v32 = vsub.f32 1.0, %v1521_v24  ;;  %2160 = vmatmul.f32.gmra.mxu2 %v2024_v15  ;;  %v1519_v48 = vmul.f32 %v3684_v46, %v1518_v33  ;;  %v1955_v46 = vld [vmem:[%s4277_s10 + $0x120] sm:$0xff]  ;;  %vm1540_vm13 = vweird.f32 %v3858_v19  ;;  %v3943_v24 = vpop.f32.mrf.mxu1  ;;  %v1961_v33 = vld [vmem:[%s4277_s10 + $0x150] sm:$0xff] }
 0x4c8   :  { %vm1545_vm15 = vcmp.eq.f32.partialorder %v1544_v26, 8.507059e+37  ;;  %v1970_v26 = vld [vmem:[%s4277_s10 + $0x198] sm:$0xff] }
 0x4c9   :  { %v1523_v43 = vmul.f32 %v2708_v8, %v1522_v32  ;;  %2543 = vmatmul.msk.f32.gmra.mxu3 %vm388_vm2, %v1519_v48  ;;  %2567 = vmatmul.msk.f32.gmra.mxu0 %vm388_vm2, %v1519_v48 }
 0x4ca   :  { %2591 = vmatmul.msk.f32.gmra.mxu1 %vm388_vm2, %v1519_v48 }
 0x4cb   :  { %v1524_v1 = vadd.f32 %v2708_v8, %v1523_v43 }
 0x4cc   :  { %v2710_v0 = vpop.eup %2709  ;;  %v1705_v53 = vpop.f32.mrf.mxu3 }
 0x4cd   :  { %v1536_v55 = vmul.f32 %v2710_v0, %v3858_v19  ;;  %v2027_v61 = vmul.f32 %v1955_v46, %v1705_v53  ;;  %v3907_v38 = vpop.xlane.xlu1 %1215  ;;  %v1528_v4 = vsel %vm3900_vm10, %v2708_v8, %v1524_v1  ;;  %vm1541_vm12 = vweird.f32 %v2710_v0  ;;  %v1964_v53 = vld [vmem:[%s4277_s10 + $0x168] sm:$0xff] }
 0x4ce   :  { %2711 = vrcp.f32 %v3907_v38  ;;  %v1533_v29 = vsel %vm1530_vm11, %v1532_v54, %v1528_v4  ;;  %vm1542_vm14 = vmor %vm1540_vm13, %vm1541_vm12  ;;  %v1547_v8 = vor.u32 1.1754944e-38, %v1546_v10  ;;  %v1561_v35 = vand.u32 2147483648, %v3907_v38 }
 0x4cf   :  { %v1537_v5 = vsub.f32 1.0, %v1536_v55  ;;  %2163 = vmatmul.f32.gmra.mxu2 %v2027_v61  ;;  %v1534_v63 = vmul.f32 %v3703_v14, %v1533_v29  ;;  %v1958_v14 = vld [vmem:[%s4277_s10 + $0x138] sm:$0xff]  ;;  %v1559_v32 = vand.u32 2147483647, %v3907_v38  ;;  %vm1555_vm3 = vweird.f32 %v3907_v38  ;;  %v3958_v34 = vpop.f32.mrf.mxu1  ;;  %v3966_v61 = vpop.f32.mrf.mxu0 }
 0x4d0   :  { %v1562_v48 = vor.u32 1.1754944e-38, %v1561_v35 }
 0x4d1   :  { %v1538_v7 = vmul.f32 %v2710_v0, %v1537_v5  ;;  %2544 = vmatmul.msk.f32.gmra.mxu3 %vm388_vm2, %v1534_v63  ;;  %2568 = vmatmul.msk.f32.gmra.mxu0 %vm388_vm2, %v1534_v63  ;;  %vm1560_vm6 = vcmp.eq.f32.partialorder %v1559_v32, 8.507059e+37  ;;  %v1967_v5 = vld [vmem:[%s4277_s10 + $0x180] sm:$0xff] }
 0x4d2   :  { %2592 = vmatmul.msk.f32.gmra.mxu1 %vm388_vm2, %v1534_v63  ;;  %v1920_v63 = vld [vmem:[%s4277_s10 + $0x8] sm:$0xff] }
 0x4d3   :  { %v1539_v47 = vadd.f32 %v2710_v0, %v1538_v7  ;;  %v1992_v10 = vmul.f32 %v1920_v63, %v3759_v40  ;;  %v1995_v40 = vmul.f32 %v1923_v12, %v3761_v13  ;;  %v1953_v12 = vld [vmem:[%s4277_s10 + $0x110] sm:$0xff] }
 0x4d4   :  { %v2712_v18 = vpop.eup %2711  ;;  %v1708_v20 = vpop.f32.mrf.mxu3 }
 0x4d5   :  { %v1543_v21 = vsel %vm1542_vm14, %v2710_v0, %v1539_v47  ;;  %v1551_v39 = vmul.f32 %v2712_v18, %v3907_v38  ;;  %v2030_v22 = vmul.f32 %v1958_v14, %v1708_v20  ;;  %v1219_v57 = vpop.xlane.xlu2 %1218  ;;  %vm1556_vm0 = vweird.f32 %v2712_v18  ;;  %v1924_v47 = vld [vmem:[%s4277_s10 + $0x28] sm:$0xff] }
 0x4d6   :  { %2713 = vrcp.f32 %v1219_v57  ;;  %v1548_v19 = vsel %vm1545_vm15, %v1547_v8, %v1543_v21  ;;  %vm1557_vm5 = vmor %vm1555_vm3, %vm1556_vm0  ;;  %v1576_v49 = vand.u32 2147483648, %v1219_v57  ;;  %v1574_v52 = vand.u32 2147483647, %v1219_v57  ;;  %v1973_v8 = vld [vmem:[%s4277_s10 + $0x1b0] sm:$0xff] }
 0x4d7   :  { %v1552_v15 = vsub.f32 1.0, %v1551_v39  ;;  %2166 = vmatmul.f32.gmra.mxu2 %v2030_v22  ;;  %v1549_v23 = vmul.f32 %v3719_v42, %v1548_v19  ;;  %vm1570_vm7 = vweird.f32 %v1219_v57  ;;  %v1859_v29 = vpop.f32.mrf.mxu1  ;;  %v3981_v7 = vpop.f32.mrf.mxu0  ;;  %v1926_v22 = vld [vmem:[%s4277_s10 + $0x38] sm:$0xff] }
 0x4d8   :  { %vm1575_vm9 = vcmp.eq.f32.partialorder %v1574_v52, 8.507059e+37 }
 0x4d9   :  { %v1553_v28 = vmul.f32 %v2712_v18, %v1552_v15  ;;  %2545 = vmatmul.msk.f32.gmra.mxu3 %vm388_vm2, %v1549_v23  ;;  %2569 = vmatmul.msk.f32.gmra.mxu0 %vm388_vm2, %v1549_v23 }
 0x4da   :  { %2593 = vmatmul.msk.f32.gmra.mxu1 %vm388_vm2, %v1549_v23  ;;  %v1929_v23 = vld [vmem:[%s4277_s10 + $0x50] sm:$0xff] }
 0x4db   :  { %v1554_v30 = vadd.f32 %v2712_v18, %v1553_v28  ;;  %v1930_v28 = vld [vmem:[%s4277_s10 + $0x58] sm:$0xff] }
 0x4dc   :  { %v2714_v42 = vpop.eup %2713  ;;  %v1711_v2 = vpop.f32.mrf.mxu3 }
 0x4dd   :  { %v1558_v43 = vsel %vm1557_vm5, %v2712_v18, %v1554_v30  ;;  %v1566_v31 = vmul.f32 %v2714_v42, %v1219_v57  ;;  %v2033_v44 = vmul.f32 %v1961_v33, %v1711_v2  ;;  %vm1571_vm4 = vweird.f32 %v2714_v42  ;;  %v1927_v57 = vld [vmem:[%s4277_s10 + $0x40] sm:$0xff] }
 0x4de   :  { %v1563_v11 = vsel %vm1560_vm6, %v1562_v48, %v1558_v43  ;;  %vm1572_vm8 = vmor %vm1570_vm7, %vm1571_vm4  ;;  %v1999_v19 = vmul.f32 %v1927_v57, %v3943_v24  ;;  %v2001_v33 = vmul.f32 %v1929_v23, %v3771_v41  ;;  %v2002_v30 = vmul.f32 %v1930_v28, %v3958_v34  ;;  %v1933_v24 = vld [vmem:[%s4277_s10 + $0x70] sm:$0xff]  ;;  %v1935_v41 = vld [vmem:[%s4277_s10 + $0x80] sm:$0xff] }
 0x4df   :  { %v1567_v46 = vsub.f32 1.0, %v1566_v31  ;;  %2169 = vmatmul.f32.gmra.mxu2 %v2033_v44  ;;  %v1564_v1 = vmul.f32 %v3731_v56, %v1563_v11  ;;  %v1577_v56 = vor.u32 1.1754944e-38, %v1576_v49  ;;  %v1862_v18 = vpop.f32.mrf.mxu1  ;;  %v3996_v21 = vpop.f32.mrf.mxu0  ;;  %v2005_v2 = vmul.f32 %v1933_v24, %v1859_v29  ;;  %v1936_v31 = vld [vmem:[%s4277_s10 + $0x88] sm:$0xff]  ;;  %v1939_v49 = vld [vmem:[%s4277_s10 + $0xa0] sm:$0xff] }
 0x4e0   :  { %v2007_v11 = vmul.f32 %v1935_v41, %v3824_v59  ;;  %v1941_v59 = vld [vmem:[%s4277_s10 + $0xb0] sm:$0xff]  ;;  %v1948_v29 = vld [vmem:[%s4277_s10 + $0xe8] sm:$0xff]  ;;  %v1959_v28 = vld [vmem:[%s4277_s10 + $0x140] sm:$0xff] }
 0x4e1   :  { %v1568_v0 = vmul.f32 %v2714_v42, %v1567_v46  ;;  %2546 = vmatmul.msk.f32.gmra.mxu3 %vm388_vm2, %v1564_v1  ;;  %2570 = vmatmul.msk.f32.gmra.mxu0 %vm388_vm2, %v1564_v1  ;;  %v2008_v46 = vmul.f32 %v1936_v31, %v1862_v18  ;;  %v1963_v41 = vld [vmem:[%s4277_s10 + $0x160] sm:$0xff] }
 0x4e2   :  { %2594 = vmatmul.msk.f32.gmra.mxu1 %vm388_vm2, %v1564_v1  ;;  %v1938_v1 = vld [vmem:[%s4277_s10 + $0x98] sm:$0xff] }
 0x4e3   :  { %v1569_v54 = vadd.f32 %v2714_v42, %v1568_v0  ;;  %v2010_v34 = vmul.f32 %v1938_v1, %v3879_v16 }
 0x4e4   :  { %v1714_v55 = vpop.f32.mrf.mxu3 }
 0x4e5   :  { %v1573_v38 = vsel %vm1572_vm8, %v2714_v42, %v1569_v54  ;;  %v2036_v4 = vmul.f32 %v1964_v53, %v1714_v55  ;;  %v1942_v53 = vld [vmem:[%s4277_s10 + $0xb8] sm:$0xff] }
 0x4e6   :  { %v1578_v3 = vsel %vm1575_vm9, %v1577_v56, %v1573_v38  ;;  %v2013_v56 = vmul.f32 %v1941_v59, %v3925_v6  ;;  %v1944_v38 = vld [vmem:[%s4277_s10 + $0xc8] sm:$0xff]  ;;  %v1947_v6 = vld [vmem:[%s4277_s10 + $0xe0] sm:$0xff]  ;;  %v1966_v59 = vld [vmem:[%s4277_s10 + $0x178] sm:$0xff] }
 0x4e7   :  { %2172 = vmatmul.f32.gmra.mxu2 %v2036_v4  ;;  %v1579_v25 = vmul.f32 %v3740_v58, %v1578_v3  ;;  %v1921_v58 = vld [vmem:[%s4277_s10 + $0x10] sm:$0xff]  ;;  %v1865_v15 = vpop.f32.mrf.mxu1  ;;  %v4009_v35 = vpop.f32.mrf.mxu0  ;;  %v2019_v63 = vmul.f32 %v1947_v6, %v3966_v61 }
 0x4e8   :  { %v1993_v62 = vmul.f32 %v1921_v58, %v3843_v27  ;;  %v1996_v27 = vmul.f32 %v1924_v47, %v3904_v36  ;;  %v1998_v36 = vmul.f32 %v1926_v22, %v3763_v50  ;;  %v1932_v50 = vld [vmem:[%s4277_s10 + $0x68] sm:$0xff]  ;;  %v2011_v0 = vmul.f32 %v1939_v49, %v1865_v15  ;;  %v1945_v4 = vld [vmem:[%s4277_s10 + $0xd0] sm:$0xff]  ;;  %v1954_v47 = vld [vmem:[%s4277_s10 + $0x118] sm:$0xff] }
 0x4e9   :  { %2547 = vmatmul.msk.f32.gmra.mxu3 %vm388_vm2, %v1579_v25  ;;  %2571 = vmatmul.msk.f32.gmra.mxu0 %vm388_vm2, %v1579_v25  ;;  %v2004_v48 = vmul.f32 %v1932_v50, %v3782_v45 }
 0x4ea   :  { %2595 = vmatmul.msk.f32.gmra.mxu1 %vm388_vm2, %v1579_v25  ;;  %v2016_v25 = vmul.f32 %v1944_v38, %v3953_v37  ;;  %v1950_v37 = vld [vmem:[%s4277_s10 + $0xf8] sm:$0xff]  ;;  %vm2382_vm2 = vcmask 523264  }
 0x4ec   :  { %v1717_v17 = vpop.f32.mrf.mxu3 }
 0x4ed   :  { %v2039_v9 = vmul.f32 %v1967_v5, %v1717_v17 }
 0x4ef   :  { %2175 = vmatmul.f32.gmra.mxu2 %v2039_v9  ;;  %v1868_v32 = vpop.f32.mrf.mxu1  ;;  %v4025_v42 = vpop.f32.mrf.mxu0 }
 0x4f0   :  { %v2014_v55 = vmul.f32 %v1942_v53, %v1868_v32  ;;  %v1960_v32 = vld [vmem:[%s4277_s10 + $0x148] sm:$0xff]  ;;  %v2031_v24 = vmul.f32 %v1959_v28, %v4025_v42 }
 0x4f1   :  { %2216 = vmatmul.f32.vlgmr.msra.gmra.mxu3 %v1992_v10  ;;  %2305 = vmatmul.f32.vlgmr.msra.gmra.mxu0 %v1993_v62  ;;  %v1951_v10 = vld [vmem:[%s4277_s10 + $0x100] sm:$0xff] }
 0x4f4   :  { %v1720_v14 = vpop.f32.mrf.mxu3 }
 0x4f5   :  { %v2042_v20 = vmul.f32 %v1970_v26, %v1720_v14  ;;  %v2022_v26 = vmul.f32 %v1950_v37, %v3981_v7  ;;  %v1976_v7 = vld [vmem:[%s4277_s10 + $0x1c8] sm:$0xff]  ;;  %v1971_v37 = vld [vmem:[%s4277_s10 + $0x1a0] sm:$0xff] }
 0x4f7   :  { %2178 = vmatmul.f32.gmra.mxu2 %v2042_v20  ;;  %v1871_v43 = vpop.f32.mrf.mxu1  ;;  %v4034_v44 = vpop.f32.mrf.mxu0  ;;  %v2025_v20 = vmul.f32 %v1953_v12, %v3996_v21 }
 0x4f8   :  { %v2017_v5 = vmul.f32 %v1945_v4, %v1871_v43  ;;  %v1962_v43 = vld [vmem:[%s4277_s10 + $0x158] sm:$0xff] }
 0x4f9   :  { %2219 = vmatmul.f32.gmra.mxu3 %v1995_v40  ;;  %2308 = vmatmul.f32.gmra.mxu0 %v1996_v27  ;;  %v4089_v27 = vpop.f32.mrf.mxu2 }
 0x4fc   :  { %v1723_v39 = vpop.f32.mrf.mxu3 }
 0x4fd   :  { %v2045_v13 = vmul.f32 %v1973_v8, %v1723_v39  ;;  %v1956_v8 = vld [vmem:[%s4277_s10 + $0x128] sm:$0xff]  ;;  %v1957_v39 = vld [vmem:[%s4277_s10 + $0x130] sm:$0xff] }
 0x4fe   :  { %v2028_v15 = vmul.f32 %v1956_v8, %v4009_v35 }
 0x4ff   :  { %2181 = vmatmul.f32.gmra.mxu2 %v2045_v13  ;;  %v1874_v45 = vpop.f32.mrf.mxu1  ;;  %v4044_v52 = vpop.f32.mrf.mxu0 }
 0x500   :  { %v2020_v58 = vmul.f32 %v1948_v29, %v1874_v45  ;;  %v2034_v45 = vmul.f32 %v1962_v43, %v4034_v44 }
 0x501   :  { %2222 = vmatmul.f32.gmra.mxu3 %v1998_v36  ;;  %2311 = vmatmul.f32.gmra.mxu0 %v1999_v19  ;;  %v1979_v19 = vld [vmem:[%s4277_s10 + $0x1e0] sm:$0xff]  ;;  %v4106_v23 = vpop.f32.mrf.mxu2 }
 0x507   :  { %v1877_v54 = vpop.f32.mrf.mxu1  ;;  %v4053_v16 = vpop.f32.mrf.mxu0 }
 0x508   :  { %v2023_v14 = vmul.f32 %v1951_v10, %v1877_v54  ;;  %v1972_v10 = vld [vmem:[%s4277_s10 + $0x1a8] sm:$0xff] }
 0x509   :  { %2225 = vmatmul.f32.gmra.mxu3 %v2001_v33  ;;  %2314 = vmatmul.f32.gmra.mxu0 %v2002_v30 }
 0x50f   :  { %v1880_v3 = vpop.f32.mrf.mxu1  ;;  %v4068_v17 = vpop.f32.mrf.mxu0 }
 0x510   :  { %v2026_v40 = vmul.f32 %v1954_v47, %v1880_v3  ;;  %v1988_v3 = vld [vmem:[%s4277_s10 + $0x228] sm:$0xff]  ;;  %v2043_v12 = vmul.f32 %v1971_v37, %v4068_v17  ;;  %v1990_v37 = vld [vmem:[%s4277_s10 + $0x238] sm:$0xff] }
 0x511   :  { %2228 = vmatmul.f32.gmra.mxu3 %v2004_v48  ;;  %2317 = vmatmul.f32.gmra.mxu0 %v2005_v2  ;;  %v1982_v2 = vld [vmem:[%s4277_s10 + $0x1f8] sm:$0xff] }
 0x517   :  { %v1883_v9 = vpop.f32.mrf.mxu1  ;;  %v4077_v62 = vpop.f32.mrf.mxu0 }
 0x518   :  { %v2029_v36 = vmul.f32 %v1957_v39, %v1883_v9 }
 0x519   :  { %2231 = vmatmul.f32.gmra.mxu3 %v2007_v11  ;;  %2320 = vmatmul.f32.gmra.mxu0 %v2008_v46  ;;  %v2134_v11 = vpop.f32.mrf.mxu2 }
 0x51f   :  { %v1886_v61 = vpop.f32.mrf.mxu1 }
 0x520   :  { %v2032_v48 = vmul.f32 %v1960_v32, %v1886_v61 }
 0x521   :  { %2234 = vmatmul.f32.gmra.mxu3 %v2010_v34  ;;  %2323 = vmatmul.f32.gmra.mxu0 %v2011_v0  ;;  %v1985_v34 = vld [vmem:[%s4277_s10 + $0x210] sm:$0xff] }
 0x522   :  { %v1965_v0 = vld [vmem:[%s4277_s10 + $0x170] sm:$0xff] }
 0x527   :  { %v1889_v22 = vpop.f32.mrf.mxu1 }
 0x528   :  { %v2035_v1 = vmul.f32 %v1963_v41, %v1889_v22 }
 0x529   :  { %2237 = vmatmul.f32.gmra.mxu3 %v2013_v56  ;;  %2326 = vmatmul.f32.gmra.mxu0 %v2014_v55  ;;  %v2137_v56 = vpop.f32.mrf.mxu2  ;;  %v2037_v55 = vmul.f32 %v1965_v0, %v4044_v52 }
 0x52f   :  { %v1892_v30 = vpop.f32.mrf.mxu1 }
 0x530   :  { %v2038_v38 = vmul.f32 %v1966_v59, %v1892_v30 }
 0x531   :  { %2240 = vmatmul.f32.gmra.mxu3 %v2016_v25  ;;  %2329 = vmatmul.f32.gmra.mxu0 %v2017_v5  ;;  %v1968_v25 = vld [vmem:[%s4277_s10 + $0x188] sm:$0xff]  ;;  %v1969_v5 = vld [vmem:[%s4277_s10 + $0x190] sm:$0xff]  ;;  %v2140_v9 = vpop.f32.mrf.mxu2 }
 0x537   :  { %v1895_v49 = vpop.f32.mrf.mxu1 }
 0x539   :  { %2243 = vmatmul.f32.gmra.mxu3 %v2019_v63  ;;  %2332 = vmatmul.f32.gmra.mxu0 %v2020_v58  ;;  %v2040_v63 = vmul.f32 %v1968_v25, %v4053_v16  ;;  %v2041_v58 = vmul.f32 %v1969_v5, %v1895_v49  ;;  %v2143_v47 = vpop.f32.mrf.mxu2  ;;  %v1984_v49 = vld [vmem:[%s4277_s10 + $0x208] sm:$0xff] }
 0x53f   :  { %v1898_v4 = vpop.f32.mrf.mxu1 }
 0x540   :  { %v2044_v16 = vmul.f32 %v1972_v10, %v1898_v4  ;;  %v1987_v4 = vld [vmem:[%s4277_s10 + $0x220] sm:$0xff] }
 0x541   :  { %2246 = vmatmul.f32.gmra.mxu3 %v2022_v26  ;;  %2335 = vmatmul.f32.gmra.mxu0 %v2023_v14  ;;  %v2146_v28 = vpop.f32.mrf.mxu2 }
 0x546   :  { %v4086_v18 = vpop.f32.mrf.mxu0 }
 0x547   :  { %v1901_v26 = vpop.f32.mrf.mxu1 }
 0x549   :  { %2249 = vmatmul.f32.gmra.mxu3 %v2025_v20  ;;  %2338 = vmatmul.f32.gmra.mxu0 %v2026_v40  ;;  %v1974_v20 = vld [vmem:[%s4277_s10 + $0x1b8] sm:$0xff]  ;;  %v1975_v40 = vld [vmem:[%s4277_s10 + $0x1c0] sm:$0xff]  ;;  %v2149_v41 = vpop.f32.mrf.mxu2 }
 0x54a   :  { %v2047_v17 = vmul.f32 %v1975_v40, %v1901_v26 }
 0x54c   :  { %v1726_v57 = vpop.f32.mrf.mxu3 }
 0x54d   :  { %v2048_v21 = vmul.f32 %v1976_v7, %v1726_v57  ;;  %v2046_v57 = vmul.f32 %v1974_v20, %v4077_v62 }
 0x54e   :  { %v4100_v13 = vpop.f32.mrf.mxu0 }
 0x54f   :  { %2184 = vmatmul.f32.gmra.mxu2 %v2048_v21  ;;  %v1904_v7 = vpop.f32.mrf.mxu1 }
 0x551   :  { %2252 = vmatmul.f32.gmra.mxu3 %v2028_v15  ;;  %2341 = vmatmul.f32.gmra.mxu0 %v2029_v36  ;;  %v1977_v15 = vld [vmem:[%s4277_s10 + $0x1d0] sm:$0xff]  ;;  %v1978_v36 = vld [vmem:[%s4277_s10 + $0x1d8] sm:$0xff] }
 0x552   :  { %v2049_v62 = vmul.f32 %v1977_v15, %v4086_v18 }
 0x554   :  { %v1729_v33 = vpop.f32.mrf.mxu3 }
 0x555   :  { %v2051_v35 = vmul.f32 %v1979_v19, %v1729_v33 }
 0x556   :  { %v4114_v50 = vpop.f32.mrf.mxu0 }
 0x557   :  { %2187 = vmatmul.f32.gmra.mxu2 %v2051_v35  ;;  %v2050_v35 = vmul.f32 %v1978_v36, %v1904_v7 }
 0x559   :  { %2255 = vmatmul.f32.gmra.mxu3 %v2031_v24  ;;  %2344 = vmatmul.f32.gmra.mxu0 %v2032_v48  ;;  %v1980_v24 = vld [vmem:[%s4277_s10 + $0x1e8] sm:$0xff]  ;;  %v1981_v48 = vld [vmem:[%s4277_s10 + $0x1f0] sm:$0xff] }
 0x55c   :  { %v1732_v31 = vpop.f32.mrf.mxu3 }
 0x55d   :  { %v2054_v46 = vmul.f32 %v1982_v2, %v1732_v31 }
 0x55e   :  { %v4126_v42 = vpop.f32.mrf.mxu0 }
 0x55f   :  { %2190 = vmatmul.f32.gmra.mxu2 %v2054_v46 }
 0x561   :  { %2258 = vmatmul.f32.gmra.mxu3 %v2034_v45  ;;  %2347 = vmatmul.f32.gmra.mxu0 %v2035_v1  ;;  %v1983_v1 = vld [vmem:[%s4277_s10 + $0x200] sm:$0xff] }
 0x564   :  { %v1735_v53 = vpop.f32.mrf.mxu3 }
 0x565   :  { %v2057_v54 = vmul.f32 %v1985_v34, %v1735_v53  ;;  %v2055_v53 = vmul.f32 %v1983_v1, %v4114_v50 }
 0x566   :  { %v4138_v44 = vpop.f32.mrf.mxu0 }
 0x567   :  { %2193 = vmatmul.f32.gmra.mxu2 %v2057_v54 }
 0x569   :  { %2261 = vmatmul.f32.gmra.mxu3 %v2037_v55  ;;  %2350 = vmatmul.f32.gmra.mxu0 %v2038_v38  ;;  %v1986_v38 = vld [vmem:[%s4277_s10 + $0x218] sm:$0xff] }
 0x56a   :  { %v2058_v50 = vmul.f32 %v1986_v38, %v4126_v42 }
 0x56c   :  { %v1738_v6 = vpop.f32.mrf.mxu3 }
 0x56d   :  { %v2060_v29 = vmul.f32 %v1988_v3, %v1738_v6 }
 0x56e   :  { %v4150_v52 = vpop.f32.mrf.mxu0 }
 0x56f   :  { %2196 = vmatmul.f32.gmra.mxu2 %v2060_v29 }
 0x571   :  { %2264 = vmatmul.f32.gmra.mxu3 %v2040_v63  ;;  %2353 = vmatmul.f32.gmra.mxu0 %v2041_v58  ;;  %v1989_v58 = vld [vmem:[%s4277_s10 + $0x230] sm:$0xff] }
 0x572   :  { %v2061_v42 = vmul.f32 %v1989_v58, %v4138_v44 }
 0x574   :  { %v4159_v14 = vpop.f32.mrf.mxu3 }
 0x576   :  { %v2309_v61 = vpop.f32.mrf.mxu0 }
 0x579   :  { %2267 = vmatmul.f32.gmra.mxu3 %v2043_v12  ;;  %2356 = vmatmul.f32.gmra.mxu0 %v2044_v16 }
 0x57c   :  { %v2220_v8 = vpop.f32.mrf.mxu3 }
 0x57d   :  { %v2221_v39 = vadd.f32 %v2220_v8, %v4106_v23  ;;  %v1907_v23 = vpop.f32.mrf.mxu1 }
 0x57e   :  { %v2312_v22 = vpop.f32.mrf.mxu0  ;;  %v2053_v18 = vmul.f32 %v1981_v48, %v1907_v23 }
 0x57f   :  { %v4170_v21 = vadd.f32 %v2309_v61, %v2221_v39 }
 0x581   :  { %2270 = vmatmul.f32.gmra.mxu3 %v2046_v57  ;;  %2359 = vmatmul.f32.gmra.mxu0 %v2047_v17 }
 0x584   :  { %v2223_v19 = vpop.f32.mrf.mxu3 }
 0x585   :  { %v2224_v32 = vadd.f32 %v2223_v19, %v2134_v11  ;;  %v2052_v11 = vmul.f32 %v1980_v24, %v4100_v13  ;;  %v1910_v45 = vpop.f32.mrf.mxu1 }
 0x586   :  { %v2315_v33 = vpop.f32.mrf.mxu0  ;;  %v2056_v13 = vmul.f32 %v1984_v49, %v1910_v45 }
 0x587   :  { %v4179_v30 = vadd.f32 %v2312_v22, %v2224_v32 }
 0x589   :  { %2273 = vmatmul.f32.gmra.mxu3 %v2049_v62  ;;  %2362 = vmatmul.f32.gmra.mxu0 %v2050_v35 }
 0x58c   :  { %v2226_v2 = vpop.f32.mrf.mxu3 }
 0x58d   :  { %v2227_v43 = vadd.f32 %v2226_v2, %v2137_v56  ;;  %v2152_v56 = vpop.f32.mrf.mxu2  ;;  %v1913_v55 = vpop.f32.mrf.mxu1 }
 0x58e   :  { %v2318_v31 = vpop.f32.mrf.mxu0  ;;  %v2059_v6 = vmul.f32 %v1987_v4, %v1913_v55 }
 0x58f   :  { %v4188_v46 = vadd.f32 %v2315_v33, %v2227_v43 }
 0x591   :  { %2276 = vmatmul.f32.gmra.mxu3 %v2052_v11  ;;  %2365 = vmatmul.f32.gmra.mxu0 %v2053_v18 }
 0x594   :  { %v2229_v34 = vpop.f32.mrf.mxu3 }
 0x595   :  { %v2230_v0 = vadd.f32 %v2229_v34, %v2140_v9  ;;  %v2155_v63 = vpop.f32.mrf.mxu2  ;;  %v1916_v9 = vpop.f32.mrf.mxu1 }
 0x596   :  { %v2321_v59 = vpop.f32.mrf.mxu0  ;;  %v2062_v12 = vmul.f32 %v1990_v37, %v1916_v9 }
 0x597   :  { %v4197_v54 = vadd.f32 %v2318_v31, %v2230_v0 }
 0x599   :  { %2279 = vmatmul.f32.gmra.mxu3 %v2055_v53  ;;  %2368 = vmatmul.f32.gmra.mxu0 %v2056_v13 }
 0x59c   :  { %v2232_v3 = vpop.f32.mrf.mxu3 }
 0x59d   :  { %v2233_v25 = vadd.f32 %v2232_v3, %v2143_v47  ;;  %v2158_v47 = vpop.f32.mrf.mxu2 }
 0x59e   :  { %v2324_v5 = vpop.f32.mrf.mxu0 }
 0x59f   :  { %v4206_v29 = vadd.f32 %v2321_v59, %v2233_v25 }
 0x5a1   :  { %2282 = vmatmul.f32.gmra.mxu3 %v2058_v50  ;;  %2371 = vmatmul.f32.gmra.mxu0 %v2059_v6 }
 0x5a4   :  { %v2235_v10 = vpop.f32.mrf.mxu3 }
 0x5a5   :  { %v2236_v26 = vadd.f32 %v2235_v10, %v2146_v28  ;;  %v2161_v57 = vpop.f32.mrf.mxu2 }
 0x5a6   :  { %v2327_v61 = vpop.f32.mrf.mxu0 }
 0x5a7   :  { %v4215_v16 = vadd.f32 %v2324_v5, %v2236_v26 }
 0x5a9   :  { %2285 = vmatmul.f32.gmra.mxu3 %v2061_v42  ;;  %2374 = vmatmul.f32.gmra.mxu0 %v2062_v12 }
 0x5ac   :  { %v2238_v20 = vpop.f32.mrf.mxu3 }
 0x5ad   :  { %v2239_v40 = vadd.f32 %v2238_v20, %v2149_v41  ;;  %v2164_v28 = vpop.f32.mrf.mxu2  ;;  %v2218_v20 = vadd.f32 %v4159_v14, %v4089_v27 }
 0x5ae   :  { %v2330_v7 = vpop.f32.mrf.mxu0 }
 0x5af   :  { %v4217_v8 = vadd.f32 %v2327_v61, %v2239_v40  ;;  %v2307_v40 = vadd.f32 %v4150_v52, %v2218_v20  ;;  %v2380_v52 = vld [vmem:[%s4275_s8 + $0x10] sm:$0xff] }
 0x5b4   :  { %v2241_v39 = vpop.f32.mrf.mxu3 }
 0x5b5   :  { %v2242_v22 = vadd.f32 %v2241_v39, %v2152_v56  ;;  %v2167_v23 = vpop.f32.mrf.mxu2 }
 0x5b6   :  { %v2333_v17 = vpop.f32.mrf.mxu0 }
 0x5b7   :  { %v2331_v15 = vadd.f32 %v2330_v7, %v2242_v22 }
 0x5bc   :  { %v2244_v36 = vpop.f32.mrf.mxu3 }
 0x5bd   :  { %v2170_v35 = vpop.f32.mrf.mxu2  ;;  %v2245_v6 = vadd.f32 %v2244_v36, %v2155_v63 }
 0x5be   :  { %v2336_v19 = vpop.f32.mrf.mxu0 }
 0x5bf   :  { %v2334_v10 = vadd.f32 %v2333_v17, %v2245_v6 }
 0x5c4   :  { %v2247_v44 = vpop.f32.mrf.mxu3 }
 0x5c5   :  { %v2173_v43 = vpop.f32.mrf.mxu2  ;;  %v2248_v3 = vadd.f32 %v2247_v44, %v2158_v47 }
 0x5c6   :  { %v2339_v32 = vpop.f32.mrf.mxu0 }
 0x5c7   :  { %v2337_v37 = vadd.f32 %v2336_v19, %v2248_v3 }
 0x5cc   :  { %v2250_v33 = vpop.f32.mrf.mxu3 }
 0x5cd   :  { %v2176_v18 = vpop.f32.mrf.mxu2  ;;  %v2251_v55 = vadd.f32 %v2250_v33, %v2161_v57 }
 0x5ce   :  { %v2342_v62 = vpop.f32.mrf.mxu0 }
 0x5cf   :  { %v2340_v58 = vadd.f32 %v2339_v32, %v2251_v55 }
 0x5d4   :  { %v2253_v24 = vpop.f32.mrf.mxu3 }
 0x5d5   :  { %v2254_v53 = vadd.f32 %v2253_v24, %v2164_v28  ;;  %v4219_v56 = vpop.f32.mrf.mxu2 }
 0x5d6   :  { %v2345_v48 = vpop.f32.mrf.mxu0 }
 0x5d7   :  { %v2343_v25 = vadd.f32 %v2342_v62, %v2254_v53 }
 0x5dc   :  { %v2256_v2 = vpop.f32.mrf.mxu3 }
 0x5dd   :  { %v2257_v0 = vadd.f32 %v2256_v2, %v2167_v23  ;;  %v2182_v26 = vpop.f32.mrf.mxu2 }
 0x5de   :  { %v2348_v41 = vpop.f32.mrf.mxu0 }
 0x5df   :  { %v2346_v38 = vadd.f32 %v2345_v48, %v2257_v0 }
 0x5e4   :  { %v2259_v31 = vpop.f32.mrf.mxu3 }
 0x5e5   :  { %v2260_v1 = vadd.f32 %v2259_v31, %v2170_v35  ;;  %v2185_v63 = vpop.f32.mrf.mxu2  ;;  %v2381_v31 = vld [vmem:[%s4275_s8 + $0x18] sm:$0xff] }
 0x5e6   :  { %v2351_v11 = vpop.f32.mrf.mxu0 }
 0x5e7   :  { %v2349_v13 = vadd.f32 %v2348_v41, %v2260_v1  ;;  %v2379_v41 = vld [vmem:[%s4275_s8 + $0x8] sm:$0xff]  ;;  %v2618_v1 = vld [vmem:[%s4279_s12] ss:$0 sm:$0xff]  ;;  %s2742_s12 = smov 128  }
 0x5ec   :  { %v2262_v45 = vpop.f32.mrf.mxu3 }
 0x5ed   :  { %v2263_v49 = vadd.f32 %v2262_v45, %v2173_v43 }
 0x5ee   :  { %v2354_v34 = vpop.f32.mrf.mxu0 }
 0x5ef   :  { %v2352_v59 = vadd.f32 %v2351_v11, %v2263_v49 }
 0x5f1   :  { %2389 = vmatpush.msra.mxu1 %v2352_v59  ;;  %2598 = vmatpush.msrb.mxu3 %v2352_v59 }
 0x5f3   :  { %2390 = vmatpush.msra.mxu1 %v2349_v13  ;;  %2599 = vmatpush.msrb.mxu3 %v2349_v13 }
 0x5f4   :  { %v2265_v4 = vpop.f32.mrf.mxu3 }
 0x5f5   :  { %v2266_v5 = vadd.f32 %v2265_v4, %v2176_v18  ;;  %2391 = vmatpush.msra.mxu1 %v2346_v38  ;;  %2600 = vmatpush.msrb.mxu3 %v2346_v38 }
 0x5f6   :  { %v4221_v50 = vpop.f32.mrf.mxu0 }
 0x5f7   :  { %v4223_v9 = vadd.f32 %v2354_v34, %v2266_v5  ;;  %2392 = vmatpush.msra.mxu1 %v2343_v25  ;;  %2601 = vmatpush.msrb.mxu3 %v2343_v25 }
 0x5f9   :  { %2393 = vmatpush.msra.mxu1 %v2340_v58  ;;  %2602 = vmatpush.msrb.mxu3 %v2340_v58 }
 0x5fb   :  { %2394 = vmatpush.msra.mxu1 %v2337_v37  ;;  %2603 = vmatpush.msrb.mxu3 %v2337_v37 }
 0x5fc   :  { %v2268_v61 = vpop.f32.mrf.mxu3 }
 0x5fd   :  { %2395 = vmatpush.msra.mxu1 %v2334_v10  ;;  %2604 = vmatpush.msrb.mxu3 %v2334_v10  ;;  %v2269_v24 = vadd.f32 %v2268_v61, %v4219_v56 }
 0x5fe   :  { %v2360_v42 = vpop.f32.mrf.mxu0 }
 0x5ff   :  { %2396 = vmatpush.msra.mxu1 %v2331_v15  ;;  %2605 = vmatpush.msrb.mxu3 %v2331_v15  ;;  %v2358_v43 = vadd.f32 %v4221_v50, %v2269_v24 }
 0x601   :  { %2397 = vmatpush.msra.mxu1 %v4217_v8  ;;  %2606 = vmatpush.msrb.mxu3 %v4217_v8 }
 0x603   :  { %2398 = vmatpush.msra.mxu1 %v4215_v16  ;;  %2607 = vmatpush.msrb.mxu3 %v4215_v16 }
 0x604   :  { %v2271_v12 = vpop.f32.mrf.mxu3 }
 0x605   :  { %2399 = vmatpush.msra.mxu1 %v4206_v29  ;;  %2608 = vmatpush.msrb.mxu3 %v4206_v29  ;;  %v2188_v29 = vpop.f32.mrf.mxu2  ;;  %v2272_v62 = vadd.f32 %v2271_v12, %v2182_v26 }
 0x606   :  { %v2363_v47 = vpop.f32.mrf.mxu0 }
 0x607   :  { %2400 = vmatpush.msra.mxu1 %v4197_v54  ;;  %2609 = vmatpush.msrb.mxu3 %v4197_v54  ;;  %v2361_v2 = vadd.f32 %v2360_v42, %v2272_v62 }
 0x609   :  { %2401 = vmatpush.msra.mxu1 %v4188_v46  ;;  %2610 = vmatpush.msrb.mxu3 %v4188_v46  ;;  %v2378_v46 = vld [vmem:[%s4275_s8] sm:$0xff]  ;;  %s2741_s8 = smov [#allocation2]  }
 0x60a   :  { %s2453_s1 = sshll.u32 %s2741_s8, 4  ;;  %s2454_s1 = int_to_ptr.vmem [resolvable:$true] %s2453_s1 }
 0x60b   :  { %2402 = vmatpush.msra.mxu1 %v4179_v30  ;;  %2611 = vmatpush.msrb.mxu3 %v4179_v30 }
 0x60c   :  { %v2274_v16 = vpop.f32.mrf.mxu3 }
 0x60d   :  { %2403 = vmatpush.msra.mxu1 %v4170_v21  ;;  %2612 = vmatpush.msrb.mxu3 %v4170_v21  ;;  %v2191_v14 = vpop.f32.mrf.mxu2  ;;  %v2275_v23 = vadd.f32 %v2274_v16, %v2185_v63 }
 0x60e   :  { %v2366_v54 = vpop.f32.mrf.mxu0 }
 0x60f   :  { %2404 = vmatpush.msra.mxu1 %v2307_v40  ;;  %2613 = vmatpush.msrb.mxu3 %v2307_v40  ;;  %v2364_v48 = vadd.f32 %v2363_v47, %v2275_v23 }
 0x610   :  { %2405 = vmatmul.f32.vlgmr.msra.gmra.mxu1 %v2378_v46  ;;  %2408 = vmatmul.f32.vlgmr.msrb.gmra.mxu3 %v2380_v52 }
 0x614   :  { %v2277_v27 = vpop.f32.mrf.mxu3 }
 0x615   :  { %v2194_v30 = vpop.f32.mrf.mxu2  ;;  %v2278_v44 = vadd.f32 %v2277_v27, %v2188_v29 }
 0x616   :  { %v2369_v7 = vpop.f32.mrf.mxu0 }
 0x617   :  { %v2367_v35 = vadd.f32 %v2366_v54, %v2278_v44 }
 0x61c   :  { %v2280_v8 = vpop.f32.mrf.mxu3 }
 0x61d   :  { %v2197_v22 = vpop.f32.mrf.mxu2  ;;  %v2281_v19 = vadd.f32 %v2280_v8, %v2191_v14 }
 0x61e   :  { %v2372_v21 = vpop.f32.mrf.mxu0 }
 0x61f   :  { %v2370_v33 = vadd.f32 %v2369_v7, %v2281_v19 }
 0x624   :  { %v2283_v39 = vpop.f32.mrf.mxu3 }
 0x625   :  { %v2284_v17 = vadd.f32 %v2283_v39, %v2194_v30 }
 0x626   :  { %v2375_v36 = vpop.f32.mrf.mxu0 }
 0x627   :  { %v2373_v32 = vadd.f32 %v2372_v21, %v2284_v17 }
 0x62c   :  { %v2286_v57 = vpop.f32.mrf.mxu3 }
 0x62d   :  { %v2287_v15 = vadd.f32 %v2286_v57, %v2197_v22 }
 0x62f   :  { %v2376_v28 = vadd.f32 %v2375_v36, %v2287_v15 }
 0x631   :  { %2420 = vmatpush.msra.mxu2 %v2376_v28 }
 0x633   :  { %2421 = vmatpush.msra.mxu2 %v2373_v32 }
 0x635   :  { %2422 = vmatpush.msra.mxu2 %v2370_v33 }
 0x637   :  { %2423 = vmatpush.msra.mxu2 %v2367_v35 }
 0x639   :  { %2424 = vmatpush.msra.mxu2 %v2364_v48 }
 0x63b   :  { %2425 = vmatpush.msra.mxu2 %v2361_v2 }
 0x63d   :  { %2426 = vmatpush.msra.mxu2 %v2358_v43 }
 0x63f   :  { %2427 = vmatpush.msra.mxu2 %v4223_v9 }
 0x640   :  { %2596 = vmatmul.msk.f32.vlgmr.msra.gmra.mxu2 %vm2382_vm2, %v2379_v41 }
 0x648   :  { %2597 = vmatmul.msk.f32.gmra.mxu2 %vm2382_vm2, %v2381_v31 }
 0x68d   :  { %v2406_v11 = vpop.f32.mrf.mxu1 }
 0x693   :  { %v2409_v0 = vpop.f32.mrf.mxu3 }
 0x6c3   :  { %v2429_v18 = vpop.f32.mrf.mxu2 }
 0x6c4   :  { %v2430_v45 = vadd.f32 %v2429_v18, %v2406_v11 }
 0x6c6   :  { %v2435_v49 = vmul.f32 0.083333336, %v2430_v45 }
 0x6c8   :  { %v2441_v34 = vadd.f32 %v2618_v1, %v2435_v49 }
 0x6ca   :  { %v2443_v59 = vadd.f32 %v2441_v34, %v2961_v51 }
 0x6cb   :  { %v2432_v53 = vpop.f32.mrf.mxu2 }
 0x6cc   :  { %v2445_v13 = vmax.f32 %v2443_v59, 0.0  ;;  %v2433_v56 = vadd.f32 %v2432_v53, %v2409_v0 }
 0x6ce   :  { %2447 = vst.msk [vmem:[#allocation2] sm:$0xff] %vm96_vm1, %v2445_v13  ;;  %v2436_v55 = vmul.f32 0.083333336, %v2433_v56 }
 0x6d0   :  { %v2442_v38 = vadd.f32 %v2618_v1, %v2436_v55 }
 0x6d2   :  { %v2444_v4 = vadd.f32 %v2442_v38, %v2987_v60 }
 0x6d4   :  { %v2446_v3 = vmax.f32 %v2444_v4, 0.0 }
 0x6d6   :  { %2448 = vst.msk [vmem:[#allocation2 + $0x8] sm:$0xff] %vm96_vm1, %v2446_v3 }
 0x6d7   :  { %2461 = dma.vmem_to_hbm [thread:$0]  %s2454_s1, 256, %s2456_s6, [#allocation3], %s2742_s12, %s2742_s12, %s2743_s17  }
 0x6d8   :  { %2739 = dma.done.wait [#allocation3], 256  }
 0x6d9   :  { %2740 = vsyncadd [#allocation3], 4294967040 }
 0x6da   :  { %2466 = vsyncpa [#allocation3], 1 }

</bundles_post_ra>
